<compile_context>
chip_gen: v6e
topology: v6e:2x2x1
jax: 0.10.0
libtpu: 0.0.40
codegen_flags: <defaults>
</compile_context>

<pallas_src>
import jax
import jax.numpy as jnp
from jax.experimental import pallas as pl
from jax.experimental.pallas import tpu as pltpu


def _round_up(x, m):
    return ((x + m - 1) // m) * m


# Older JAX exposed this as TPUCompilerParams.
_CompilerParams = getattr(pltpu, "CompilerParams", None) or getattr(
    pltpu, "TPUCompilerParams")


def _resident_spec(block_shape, index_map):
    """BlockSpec for a block whose index never changes: single-buffer it."""
    if hasattr(pl, "Buffered"):
        try:
            return pl.BlockSpec(block_shape, index_map,
                                pipeline_mode=pl.Buffered(1))
        except TypeError:
            pass  # older BlockSpec without pipeline_mode
    return pl.BlockSpec(block_shape, index_map)


def _siren_kernel(x_ref, w_ref, b_ref, o_ref):
    # MXU matmul with f32 accumulation, then f32 bias-add + sin (safe on v5e).
    acc = jnp.dot(x_ref[...], w_ref[...], preferred_element_type=jnp.float32)
    o_ref[...] = jnp.sin(acc + b_ref[...]).astype(o_ref.dtype)


def siren_forward(x, weight_t, bias, *, omega_0=30.0, tile_rows=512,
                  out_dtype=jnp.float32, slice_output=True,
                  small_in_f_threshold=16):
    """SIREN forward: sin(omega_0 * (x @ weight_t + bias)).

    x: [N, in_f]; weight_t: [in_f, out_f] (f32); bias: [1, out_f] (f32).
    Returns [N, out_f] in `out_dtype` (padded lanes sliced off unless
    slice_output=False).
    """
    n, in_f = x.shape
    out_f = weight_t.shape[1]
    omega_0 = float(omega_0)

    # --- fold omega_0 into the parameters once (f32) --------------------------
    w_scaled = omega_0 * weight_t.astype(jnp.float32)
    b_scaled = omega_0 * bias.astype(jnp.float32)        # [1, out_f]

    # --- operand dtypes: bf16 for the MXU, except tiny-K coordinate layers ----
    f32_path = in_f <= small_in_f_threshold
    if f32_path:
        x_op = x.astype(jnp.float32)
        w_op = w_scaled
    else:
        x_op = x.astype(jnp.bfloat16)
        w_op = w_scaled.astype(jnp.bfloat16)

    # --- lane-dense output: pad out_features up to a multiple of 128 ----------
    out_f_p = _round_up(out_f, 128)
    if out_f_p != out_f:
        w_op = jnp.pad(w_op, ((0, 0), (0, out_f_p - out_f)))
        b_scaled = jnp.pad(b_scaled, ((0, 0), (0, out_f_p - out_f)))

    # --- row tiling: no N padding, ragged last block handled by Pallas --------
    tile_rows = max(16, _round_up(int(tile_rows), 16))
    two_core_cap = max(16, _round_up(-(-n // 2), 16))     # >=2 row tiles (v7x: 2 TCs)
    tile_rows = min(tile_rows, two_core_cap, max(16, _round_up(n, 16)))
    row_tiles = pl.cdiv(n, tile_rows)

    # --- column tiling only when W would be too large to sit resident ---------
    w_el = 4 if f32_path else 2
    if in_f * out_f_p * w_el > (8 << 20):
        tile_cols = max(128, ((4 << 20) // (in_f * w_el)) // 128 * 128)
        tile_cols = min(tile_cols, out_f_p)
    else:
        tile_cols = out_f_p
    col_tiles = pl.cdiv(out_f_p, tile_cols)
    w_resident = col_tiles == 1

    x_spec = pl.BlockSpec((tile_rows, in_f), lambda i, j: (i, 0))
    if w_resident:
        w_spec = _resident_spec((in_f, tile_cols), lambda i, j: (0, 0))
        b_spec = _resident_spec((1, tile_cols), lambda i, j: (0, 0))
    else:
        w_spec = pl.BlockSpec((in_f, tile_cols), lambda i, j: (0, j))
        b_spec = pl.BlockSpec((1, tile_cols), lambda i, j: (0, j))
    o_spec = pl.BlockSpec((tile_rows, tile_cols), lambda i, j: (i, j))

    # --- VMEM budget / cost estimate -------------------------------------------
    x_el = 4 if f32_path else 2
    out_el = jnp.dtype(out_dtype).itemsize
    vmem_need = (2 * tile_rows * in_f * x_el
                 + (1 if w_resident else 2) * in_f * tile_cols * w_el
                 + 2 * tile_cols * 4
                 + 2 * tile_rows * tile_cols * out_el)
    vmem_limit = int(min(64 << 20, max(32 << 20, 2 * vmem_need)))

    cost = pl.CostEstimate(
        flops=2 * n * in_f * out_f_p,
        transcendentals=n * out_f_p,
        bytes_accessed=(n * in_f * x_el + in_f * out_f_p * w_el
                        + out_f_p * 4 + n * out_f_p * out_el))

    out = pl.pallas_call(
        _siren_kernel,
        out_shape=jax.ShapeDtypeStruct((n, out_f_p), out_dtype),
        grid=(row_tiles, col_tiles),
        in_specs=[x_spec, w_spec, b_spec],
        out_specs=o_spec,
        compiler_params=_CompilerParams(
            dimension_semantics=("parallel", "parallel"),
            vmem_limit_bytes=vmem_limit),
        cost_estimate=cost,
    )(x_op, w_op, b_scaled)

    if slice_output and out_f_p != out_f:
        out = out[:, :out_f]
    return out


def siren_reference(x, weight_t, bias, *, omega_0=30.0, small_in_f_threshold=16):
    """Pure-JAX reference using the same dtype choices as the kernel."""
    in_f = x.shape[-1]
    w = float(omega_0) * weight_t.astype(jnp.float32)
    b = float(omega_0) * bias.astype(jnp.float32)
    if in_f <= small_in_f_threshold:
        x_op = x.astype(jnp.float32)
        w_op = w
    else:
        x_op = x.astype(jnp.bfloat16)
        w_op = w.astype(jnp.bfloat16)
    acc = jnp.dot(x_op, w_op, preferred_element_type=jnp.float32,
                  precision=jax.lax.Precision.HIGHEST)
    return jnp.sin(acc + b)


def init_siren_params(key, in_features, out_features, *, is_first=False,
                      omega_0=30.0):
    """Deterministic SIREN init (matches the PyTorch module's init_weights)."""
    kw, kb = jax.random.split(key)
    if is_first:
        bound_w = 1.0 / in_features
    else:
        bound_w = float(jnp.sqrt(6.0 / in_features)) / omega_0
    # stored transposed: [in_features, out_features]
    weight_t = jax.random.uniform(
        kw, (in_features, out_features), jnp.float32,
        minval=-bound_w, maxval=bound_w)
    # PyTorch nn.Linear default bias init: U(-1/sqrt(in), 1/sqrt(in))
    bound_b = 1.0 / float(jnp.sqrt(float(in_features)))
    bias = jax.random.uniform(
        kb, (1, out_features), jnp.float32, minval=-bound_b, maxval=bound_b)
    return weight_t, bias


# TODO(synk): for a full SIREN MLP, fuse several layers into one pallas_call
# (all bf16 weights resident in VMEM, grid only over rows) to cut HBM traffic
# to one activation read + one write.

if __name__ == "__main__":
    key = jax.random.PRNGKey(0)
    k_x, k_p1, k_p2 = jax.random.split(key, 3)

    # Small, SIREN-like shapes: 200 2-D coordinates (not a tile multiple, so
    # the ragged last row block is exercised), first layer 2->64 (padded-lane
    # path), hidden layer 64->128 (lane-dense path, bf16 operands).
    N, IN_F, H1, H2 = 200, 2, 64, 128
    OMEGA_0 = 30.0

    coords = jax.random.uniform(k_x, (N, IN_F), jnp.float32,
                                minval=-1.0, maxval=1.0)
    w1, b1 = init_siren_params(k_p1, IN_F, H1, is_first=True, omega_0=OMEGA_0)
    w2, b2 = init_siren_params(k_p2, H1, H2, is_first=False, omega_0=OMEGA_0)

    h1 = siren_forward(coords, w1, b1, omega_0=OMEGA_0)
    h1 = jax.block_until_ready(h1)
    assert h1.shape == (N, H1), h1.shape

    h2 = siren_forward(h1, w2, b2, omega_0=OMEGA_0)
    h2 = jax.block_until_ready(h2)
    assert h2.shape == (N, H2), h2.shape

    # Layer-by-layer check against a pure-JAX reference with identical
    # dtype/accumulation choices (feed the kernel's own h1 into layer 2 so
    # tolerances do not compound).
    ref1 = siren_reference(coords, w1, b1, omega_0=OMEGA_0)
    ref2 = siren_reference(h1, w2, b2, omega_0=OMEGA_0)
    err1 = float(jnp.max(jnp.abs(h1 - ref1)))
    err2 = float(jnp.max(jnp.abs(h2 - ref2)))
    assert err1 < 5e-3, err1
    assert err2 < 5e-3, err2

    print("KERNEL_OK")
</pallas_src>

<mosaic_0001>
module attributes {stable_mosaic.version = 11 : i64} {
  func.func @_siren_kernel(%arg0: i32, %arg1: i32, %arg2: memref<112x2xf32, #tpu.memory_space<vmem>>, %arg3: memref<2x128xf32, #tpu.memory_space<vmem>>, %arg4: memref<1x128xf32, #tpu.memory_space<vmem>>, %arg5: memref<112x128xf32, #tpu.memory_space<vmem>>) attributes {dimension_semantics = [#tpu.dimension_semantics<parallel>, #tpu.dimension_semantics<parallel>], iteration_bounds = array<i64: 2, 1>, scalar_prefetch = 0 : i64, scratch_operands = 0 : i64, tpu.core_type = #tpu.core_type<tc>, window_params = [{transform_indices = @transform_0, window_bounds = array<i64: 112, 2>}, {pipeline_mode = #tpu.pipeline_mode<synchronous>, transform_indices = @transform_1, window_bounds = array<i64: 2, 128>}, {pipeline_mode = #tpu.pipeline_mode<synchronous>, transform_indices = @transform_2, window_bounds = array<i64: 1, 128>}, {transform_indices = @transform_3, window_bounds = array<i64: 112, 128>}]} {
    %c0 = arith.constant 0 : index
    %c0_0 = arith.constant 0 : index
    %0 = vector.load %arg2[%c0, %c0_0] : memref<112x2xf32, #tpu.memory_space<vmem>>, vector<112x2xf32>
    %c0_1 = arith.constant 0 : index
    %c0_2 = arith.constant 0 : index
    %1 = vector.load %arg3[%c0_1, %c0_2] : memref<2x128xf32, #tpu.memory_space<vmem>>, vector<2x128xf32>
    %cst = arith.constant dense<0.000000e+00> : vector<112x128xf32>
    %2 = tpu.matmul %0, %1, %cst {dimension_numbers = #tpu.dot_dimension_numbers<[1], [0], [0], [1], [0, 0, 1, 1], [], []>} : vector<112x2xf32>, vector<2x128xf32>, vector<112x128xf32> -> vector<112x128xf32>
    %c0_3 = arith.constant 0 : index
    %c0_4 = arith.constant 0 : index
    %3 = vector.load %arg4[%c0_3, %c0_4] : memref<1x128xf32, #tpu.memory_space<vmem>>, vector<1x128xf32>
    %4 = vector.broadcast %3 : vector<1x128xf32> to vector<112x128xf32>
    %5 = arith.addf %2, %4 : vector<112x128xf32>
    %6 = math.sin %5 : vector<112x128xf32>
    %c0_5 = arith.constant 0 : index
    %c0_6 = arith.constant 0 : index
    %7 = vector.load %arg5[%c0_5, %c0_6] : memref<112x128xf32, #tpu.memory_space<vmem>>, vector<112x128xf32>
    tpu.vector_store %arg5[%c0_5, %c0_6], %6 {strides = array<i32>} : memref<112x128xf32, #tpu.memory_space<vmem>>, vector<112x128xf32>,
    return
  }
  func.func @transform_0(%arg0: i32, %arg1: i32) -> (i32, i32) {
    %c0_i32 = arith.constant 0 : i32
    %c0_i32_0 = arith.constant 0 : i32
    return %arg0, %c0_i32 : i32, i32
  }
  func.func @transform_1(%arg0: i32, %arg1: i32) -> (i32, i32) {
    %c0_i32 = arith.constant 0 : i32
    %c0_i32_0 = arith.constant 0 : i32
    %c0_i32_1 = arith.constant 0 : i32
    return %c0_i32, %c0_i32_0 : i32, i32
  }
  func.func @transform_2(%arg0: i32, %arg1: i32) -> (i32, i32) {
    %c0_i32 = arith.constant 0 : i32
    %c0_i32_0 = arith.constant 0 : i32
    %c0_i32_1 = arith.constant 0 : i32
    return %c0_i32, %c0_i32_0 : i32, i32
  }
  func.func @transform_3(%arg0: i32, %arg1: i32) -> (i32, i32) {
    %c0_i32 = arith.constant 0 : i32
    return %arg0, %arg1 : i32, i32
  }
}

</mosaic_0001>

<bundles_post_ra>
// kernel: tpu_custom_call.1
= control target key start
LH: loop header
LB: loop body
LE: loop exit
PB: predicated region body
PF: predicated region fallthrough
CT: control target
= control target key end

     0   :  { %8 = vsyncpa [#allocation3], 0  ;;  %s3500_s0 = inlined_call_operand.vmem [shape: f32[200,2], index: 0, kind: input, shape index: {}]   ;;  %s3501_s1 = inlined_call_operand.vmem [shape: f32[2,128], index: 1, kind: input, shape index: {}]   ;;  %s3502_s2 = inlined_call_operand.vmem [shape: f32[1,128], index: 2, kind: input, shape index: {}]   ;;  %s3503_s3 = inlined_call_operand.hbm [shape: f32[200,128], index: 3, kind: output, shape index: {}]  }
   0x1   :  { %10 = vsyncpa [#allocation3 + $0x1], 0  ;;  %s2387_s12 = smov 0   ;;  %s2389_s13 = smov 0  }
   0x2   :  { %s2391_s14 = smov 0   ;;  %s2393_s15 = smov 0  }
   0x3   :  { %s2395_s16 = smov 0   ;;  %s2397_s17 = smov 0  }
   0x4 LB: > { %s1977_s18 = sadd.s32 4294967295, %s2356_s17   ;;  %s1978_s19 = sadd.s32 4294967294, %s2356_s17   ;;  %s2356_s17 = sphi %s2397_s17, %s16_s17   ;;  %s2352_s16 = sphi %s2395_s16, %s3534_s16   ;;  %s2348_s15 = sphi %s2393_s15, %s3533_s15   ;;  %s2344_s14 = sphi %s2391_s14, %s3532_s14   ;;  %s2340_s13 = sphi %s2389_s13, %s3531_s13   ;;  %s2336_s12 = sphi %s2387_s12, %s3530_s12  }
   0x5   : > { %s28_s20 = sadd.s32 1, %s2352_s16  ;;  %s105_s21 = sadd.s32 1, %s2344_s14 }
   0x6   : > { %p30_p0 = scmp.ge.s32.totalorder %s28_s20, 2  ;;  %p115_p1 = scmp.ne.s32.totalorder %s2344_s14, %s2340_s13 }
   0x7   : > { %p116_p2 = scmp.eq.s32.totalorder %s1977_s18, 1  ;;  %p121_p3 = scmp.ne.s32.totalorder %s2340_s13, %s2336_s12 }
   0x8   : > { %s3536_s20 = smov (%p30_p0, %s28_s20), 0  ;;  %p122_p5 = scmp.eq.s32.totalorder %s1978_s19, 1 }
   0x9   : > { %p2427_p4 = por %p116_p2, %p115_p1  ;;  %s100_s23 = ssub.s32 %s2352_s16, %s3536_s20 }
   0xa   : > { %p1981_p6 = scmp.ge.s32.totalorder %s2356_s17, 1  ;;  %p103_p7 = scmp.eq.s32.totalorder %s100_s23, 0 }
   0xb   : > { %p2434_p8 = por %p122_p5, %p121_p3  ;;  %p163_p9 = scmp.lt.s32.totalorder %s2356_s17, 3 }
   0xc   : > { %s2440_s25 = scalar_select %p103_p7, %s2344_s14, %s105_s21  }
   0xd   : > { %p164_p10 = pnand %p1981_p6, %p163_p9 }
   0xe   : > { %s2446_s28 = smul.u32 (!%p164_p10), 14, %s2348_s15  ;;  %s188_s7 = sand.u32 (!%p164_p10), 1, %s2340_s13  }
   0xf   : > { %167 = sbr.rel (%p164_p10) target bundleno = 634 (0x27a), region = 32  ;;  %s3435_s26 = scalar_lea.sflag (!%p164_p10), [#allocation3], %s188_s7 }
  0x10   : > { %p196_p11 = scmp.lt.s32.totalorder (!%p164_p10), %s2446_s28, 24  ;;  %s2722_s10 = smul.u32 (!%p164_p10), 112, %s188_s7 }
  0x12   : > { %s2751_s11 = scalar_lea.vmem (!%p164_p10), [#allocation2], %s2722_s10 }
  0x14   : > { %v224_v0 = vld [vmem:[%s3501_s1] sm:$0x3]  ;;  %vm275_vm0 = vcmask 1041408   ;;  %s197_s29 = scalar_select %p196_p11, %s2446_s28, 24  ;;  %vm232_vm1 = vcmask 15360  }
  0x15   : > { %2078 = vmatprep.subr.msk.mxu0 %vm275_vm0, %v224_v0  ;;  %2101 = vmatprep.subr.msk.mxu1 %vm275_vm0, %v224_v0  ;;  %v2471_v15 = vld [vmem:[%s3502_s2] ss:$0 sm:$0xff]  ;;  %v2358_v49 = vmov 683565275   ;;  %v2359_v53 = vmov 2475754826  }
  0x16   : > { %2079 = vmatpush3.msk.msra.mxu0 %vm275_vm0, %v224_v0  ;;  %2102 = vmatpush3.msk.msra.mxu1 %vm275_vm0, %v224_v0  ;;  %s1982_s30 = sshll.u32 %s197_s29, 3  ;;  %v2360_v55 = vmov 2131351028   ;;  %v2361_v57 = vmov 2102212464   ;;  %s1893_s27 = ssub.s32 (%p2427_p4), 25, %s2446_s28 }
  0x17   : > { %s199_s6 = scalar_lea.vmem %s3500_s0, %s1982_s30  ;;  %v2362_v59 = vmov 920167782   ;;  %p1894_p12 = scmp.lt.s32.totalorder (%p2427_p4), %s1893_s27, 14 }
  0x18   : > { %v210_v1 = vld [vmem:[%s199_s6] sm:$0xff]  ;;  %v211_v3 = vld [vmem:[%s199_s6 + $0x8] sm:$0xff]  ;;  %v212_v5 = vld [vmem:[%s199_s6 + $0x10] sm:$0xff] }
  0x19   : > { %v218_v2 = vld [vmem:[%s199_s6 + $0x40] sm:$0xff]  ;;  %2080 = vmatprep.mubr.msk.f32.mxu0 %vm232_vm1, %v210_v1  ;;  %v219_v4 = vld [vmem:[%s199_s6 + $0x48] sm:$0xff]  ;;  %v220_v6 = vld [vmem:[%s199_s6 + $0x50] sm:$0xff] }
  0x1a   : > { %2092 = vmatprep.mubr.msk.f32.mxu1 %vm232_vm1, %v218_v2  ;;  %2081 = vmatmul.mubr.msk.f32.vlgmr.msra.gmra.mxu0 %vm232_vm1, %v211_v3  ;;  %v213_v7 = vld [vmem:[%s199_s6 + $0x18] sm:$0xff]  ;;  %v214_v9 = vld [vmem:[%s199_s6 + $0x20] sm:$0xff]  ;;  %v215_v11 = vld [vmem:[%s199_s6 + $0x28] sm:$0xff]  ;;  %v2363_v2 = vmov 1326507024  }
  0x1b   : > { %2093 = vmatmul.mubr.msk.f32.vlgmr.msra.gmra.mxu1 %vm232_vm1, %v219_v4  ;;  %2083 = vmatprep.mubr.msk.f32.mxu0 %vm232_vm1, %v212_v5  ;;  %v221_v8 = vld [vmem:[%s199_s6 + $0x58] sm:$0xff]  ;;  %v222_v10 = vld [vmem:[%s199_s6 + $0x60] sm:$0xff]  ;;  %v223_v12 = vld [vmem:[%s199_s6 + $0x68] sm:$0xff] }
  0x1c   : > { %2095 = vmatprep.mubr.msk.f32.mxu1 %vm232_vm1, %v220_v6  ;;  %v216_v13 = vld [vmem:[%s199_s6 + $0x30] sm:$0xff]  ;;  %v217_v14 = vld [vmem:[%s199_s6 + $0x38] sm:$0xff] }
  0x1e   : > { %2084 = vmatmul.mubr.msk.f32.gmra.mxu0 %vm232_vm1, %v213_v7 }
  0x1f   : > { %2096 = vmatmul.mubr.msk.f32.gmra.mxu1 %vm232_vm1, %v221_v8  ;;  %2086 = vmatprep.mubr.msk.f32.mxu0 %vm232_vm1, %v214_v9 }
  0x20   : > { %2098 = vmatprep.mubr.msk.f32.mxu1 %vm232_vm1, %v222_v10 }
  0x22   : > { %2087 = vmatmul.mubr.msk.f32.gmra.mxu0 %vm232_vm1, %v215_v11 }
  0x23   : > { %2099 = vmatmul.mubr.msk.f32.gmra.mxu1 %vm232_vm1, %v223_v12  ;;  %2089 = vmatprep.mubr.msk.f32.mxu0 %vm232_vm1, %v216_v13 }
  0x26   : > { %2090 = vmatmul.mubr.msk.f32.gmra.mxu0 %vm232_vm1, %v217_v14 }
  0xda   : > { %v2082_v16 = vpop.f32.mrf.mxu0 }
  0xdb   : > { %v2094_v17 = vpop.f32.mrf.mxu1  ;;  %v2474_v18 = vadd.f32 %v2082_v16, %v2471_v15 }
  0xdc   : > { %v2477_v19 = vadd.f32 %v2094_v17, %v2471_v15  ;;  %v345_v20 = vpop.f32.mrf.mxu0 }
  0xdd   : > { %v518_v21 = vand.u32 2147483647, %v2474_v18  ;;  %v521_v22 = vand.u32 2139095040, %v2474_v18  ;;  %v2486_v27 = vadd.f32 %v2471_v15, %v345_v20  ;;  %vm520_vm15 = vcmp.lt.s32.totalorder %v2474_v18, 0 }
  0xde   : > { %v1350_v23 = vand.u32 2147483647, %v2477_v19  ;;  %v1353_v24 = vand.u32 2139095040, %v2477_v19 }
  0xdf   : > { %v522_v25 = vshrl.u32 %v521_v22, 23  ;;  %v525_v26 = vand.u32 8388607, %v518_v21  ;;  %v417_v32 = vand.u32 2139095040, %v2486_v27  ;;  %v414_v37 = vand.u32 2147483647, %v2486_v27 }
  0xe0   : > { %v1354_v28 = vshrl.u32 %v1353_v24, 23  ;;  %v1357_v29 = vand.u32 8388607, %v1350_v23  ;;  %vm2594_vm0 = vcmp.le.f32.partialorder %v518_v21, 0.7853982 }
  0xe1   : > { %v2003_v30 = vadd.s32 4294967169, %v522_v25  ;;  %v526_v33 = vor.u32 8388608, %v525_v26  ;;  %v418_v38 = vshrl.u32 %v417_v32, 23  ;;  %v2500_v47 = vand.u32 8388607, %v414_v37 }
  0xe2   : > { %v2035_v31 = vadd.s32 4294967169, %v1354_v28  ;;  %v1358_v35 = vor.u32 8388608, %v1357_v29 }
  0xe3   : > { %v528_v34 = vadd.s32 1, %v2003_v30  ;;  %v1999_v40 = vadd.s32 4294967169, %v418_v38  ;;  %v2492_v44 = vshll.u32 %v526_v33, 8 }
  0xe4   : > { %v1360_v36 = vadd.s32 1, %v2035_v31  ;;  %v2496_v46 = vshll.u32 %v1358_v35, 8 }
  0xe5   : > { %vm529_vm2 = vcmp.gt.s32.totalorder %v528_v34, 0  ;;  %v2503_v52 = vadd.s32 1, %v1999_v40 }
  0xe6   : > { %v530_v39 = vsel %vm529_vm2, %v528_v34, 0  ;;  %vm1361_vm3 = vcmp.gt.s32.totalorder %v1360_v36, 0 }
  0xe7   : > { %v531_v41 = vshrl.u32 %v530_v39, 5  ;;  %v532_v42 = vand.u32 31, %v530_v39  ;;  %v1362_v43 = vsel %vm1361_vm3, %v1360_v36, 0  ;;  %vm425_vm13 = vcmp.gt.s32.totalorder %v2503_v52, 0 }
  0xe8   : > { %v2494_v45 = vshrl.u32 %v1362_v43, 5  ;;  %v1364_v51 = vand.u32 31, %v1362_v43 }
  0xe9   : > { %v533_v48 = vsub.s32 32, %v532_v42  ;;  %v535_v50 = vshll.u32 %v2358_v49, %v532_v42  ;;  %v538_v54 = vshll.u32 %v2359_v53, %v532_v42  ;;  %v541_v56 = vshll.u32 %v2360_v55, %v532_v42 }
  0xea   : > { %v544_v58 = vshll.u32 %v2361_v57, %v532_v42  ;;  %v547_v60 = vshll.u32 %v2362_v59, %v532_v42  ;;  %vm550_vm4 = vcmp.lt.s32.totalorder %v531_v41, 1  ;;  %vm552_vm5 = vcmp.lt.s32.totalorder %v531_v41, 3 }
  0xeb   : > { %v536_v61 = vshrl.u32 %v2359_v53, %v533_v48  ;;  %v539_v62 = vshrl.u32 %v2360_v55, %v533_v48  ;;  %v542_v63 = vshrl.u32 %v2361_v57, %v533_v48  ;;  %v534_v0 = vshrl.u32 %v2358_v49, %v533_v48 }
  0xec   : > { %v545_v1 = vshrl.u32 %v2362_v59, %v533_v48  ;;  %v548_v3 = vshrl.u32 %v2363_v2, %v533_v48  ;;  %v1365_v7 = vsub.s32 32, %v1364_v51  ;;  %vm553_vm6 = vcmp.lt.s32.totalorder %v531_v41, 4 }
  0xed   : > { %v537_v4 = vor.u32 %v536_v61, %v535_v50  ;;  %v540_v5 = vor.u32 %v539_v62, %v538_v54  ;;  %v543_v6 = vor.u32 %v542_v63, %v541_v56  ;;  %v1367_v10 = vshll.u32 %v2358_v49, %v1364_v51 }
  0xee   : > { %v546_v8 = vor.u32 %v545_v1, %v544_v58  ;;  %v549_v9 = vor.u32 %v548_v3, %v547_v60  ;;  %v1370_v22 = vshll.u32 %v2359_v53, %v1364_v51  ;;  %vm551_vm7 = vcmp.lt.s32.totalorder %v531_v41, 2 }
  0xef   : > { %v554_v11 = vsel %vm550_vm4, %v534_v0, %v537_v4  ;;  %v555_v12 = vsel %vm553_vm6, %v543_v6, 2102212464  ;;  %v558_v13 = vsel %vm550_vm4, %v537_v4, %v540_v5  ;;  %v562_v14 = vsel %vm550_vm4, %v540_v5, %v543_v6 }
  0xf0   : > { %v556_v16 = vsel %vm552_vm5, %v540_v5, %v555_v12  ;;  %v559_v17 = vsel %vm553_vm6, %v546_v8, 920167782  ;;  %v563_v20 = vsel %vm553_vm6, %v549_v9, 1326507024  ;;  %v1368_v26 = vshrl.u32 %v2359_v53, %v1365_v7 }
  0xf1   : > { %v560_v24 = vsel %vm552_vm5, %v543_v6, %v559_v17  ;;  %v564_v25 = vsel %vm552_vm5, %v546_v8, %v563_v20  ;;  %v557_v28 = vsel %vm551_vm7, %v554_v11, %v556_v16  ;;  %v1371_v31 = vshrl.u32 %v2360_v55, %v1365_v7  ;;  %v385_v6 = vpop.f32.mrf.mxu1 }
  0xf2   : > { %v561_v29 = vsel %vm551_vm7, %v558_v13, %v560_v24  ;;  %v565_v30 = vsel %vm551_vm7, %v562_v14, %v564_v25  ;;  %v1369_v36 = vor.u32 %v1368_v26, %v1367_v10  ;;  %v1373_v39 = vshll.u32 %v2360_v55, %v1364_v51 }
  0xf3   : > { %v2526_v32 = vmul.u32.u64.low %v2492_v44, %v565_v30  ;;  %v2527_v33 = vmul.u32.u64.high %v2492_v44, %v565_v30, %v2526_v32  ;;  %v2530_v34 = vmul.u32.u64.low %v2492_v44, %v561_v29  ;;  %v2531_v35 = vmul.u32.u64.high %v2492_v44, %v561_v29, %v2530_v34 }
  0xf4   : > { %v1372_v38 = vor.u32 %v1371_v31, %v1370_v22  ;;  %v1374_v40 = vshrl.u32 %v2361_v57, %v1365_v7  ;;  %v1376_v41 = vshll.u32 %v2361_v57, %v1364_v51  ;;  %v1377_v42 = vshrl.u32 %v2362_v59, %v1365_v7 }
  0xf5   : > { %v1379_v43 = vshll.u32 %v2362_v59, %v1364_v51  ;;  %v1380_v48 = vshrl.u32 %v2363_v2, %v1365_v7  ;;  %v573_v50 = vmul.u32 %v2492_v44, %v557_v28  ;;  %v1366_v54 = vshrl.u32 %v2358_v49, %v1365_v7 }
  0xf6   : > { %v1375_v56 = vor.u32 %v1374_v40, %v1373_v39  ;;  %vm1382_vm8 = vcmp.lt.s32.totalorder %v2494_v45, 1  ;;  %vm575_vm9 = vc.u32 %v2527_v33, %v2530_v34  ;;  %v576_v58 = vadd.s32 1, %v2531_v35 }
  0xf7   : > { %v1378_v60 = vor.u32 %v1377_v42, %v1376_v41  ;;  %vm1383_vm10 = vcmp.lt.s32.totalorder %v2494_v45, 2  ;;  %v1381_v61 = vor.u32 %v1380_v48, %v1379_v43  ;;  %vm1384_vm11 = vcmp.lt.s32.totalorder %v2494_v45, 3 }
  0xf8   : > { %vm1385_vm12 = vcmp.lt.s32.totalorder %v2494_v45, 4  ;;  %v1390_v51 = vsel %vm1382_vm8, %v1369_v36, %v1372_v38  ;;  %v577_v44 = vsel %vm575_vm9, %v576_v58, %v2531_v35  ;;  %v1394_v0 = vsel %vm1382_vm8, %v1372_v38, %v1375_v56 }
  0xf9   : > { %v1387_v62 = vsel %vm1385_vm12, %v1375_v56, 2102212464  ;;  %v1391_v63 = vsel %vm1385_vm12, %v1378_v60, 920167782  ;;  %v578_v1 = vadd.s32 %v577_v44, %v573_v50  ;;  %v1386_v3 = vsel %vm1382_vm8, %v1366_v54, %v1369_v36 }
  0xfa   : > { %v1392_v4 = vsel %vm1384_vm11, %v1375_v56, %v1391_v63  ;;  %v1395_v5 = vsel %vm1385_vm12, %v1381_v61, 1326507024  ;;  %v1388_v7 = vsel %vm1384_vm11, %v1372_v38, %v1387_v62  ;;  %v426_v17 = vsel %vm425_vm13, %v2503_v52, 0 }
  0xfb   : > { %v1393_v8 = vsel %vm1383_vm10, %v1390_v51, %v1392_v4  ;;  %v1396_v9 = vsel %vm1384_vm11, %v1378_v60, %v1395_v5  ;;  %v579_v10 = vadd.s32 536870912, %v578_v1  ;;  %v2566_v20 = vadd.f32 %v2471_v15, %v385_v6 }
  0xfc   : > { %v1397_v11 = vsel %vm1383_vm10, %v1394_v0, %v1396_v9  ;;  %v2556_v12 = vmul.u32.u64.low %v2496_v46, %v1393_v8  ;;  %v2557_v13 = vmul.u32.u64.high %v2496_v46, %v1393_v8, %v2556_v12  ;;  %v1389_v24 = vsel %vm1383_vm10, %v1386_v3, %v1388_v7 }
  0xfd   : > { %v2561_v14 = vmul.u32.u64.low %v2496_v46, %v1397_v11  ;;  %v2562_v16 = vmul.u32.u64.high %v2496_v46, %v1397_v11, %v2561_v14  ;;  %v580_v22 = vshrl.u32 %v579_v10, 30  ;;  %v428_v25 = vand.u32 31, %v426_v17 }
  0xfe   : > { %v1408_v28 = vadd.s32 1, %v2557_v13  ;;  %v422_v29 = vor.u32 8388608, %v2500_v47  ;;  %v1405_v30 = vmul.u32 %v2496_v46, %v1389_v24  ;;  %v1249_v52 = vand.u32 2139095040, %v2566_v20 }
  0xff   : > { %v581_v26 = vshll.u32 %v580_v22, 30  ;;  %vm1407_vm14 = vc.u32 %v2562_v16, %v2556_v12  ;;  %v429_v31 = vsub.s32 32, %v428_v25  ;;  %v1246_v39 = vand.u32 2147483647, %v2566_v20 }
 0x100   : > { %v1409_v35 = vsel %vm1407_vm14, %v1408_v28, %v2557_v13  ;;  %v2578_v38 = vshll.u32 %v422_v29, 8  ;;  %v1250_v41 = vshrl.u32 %v1249_v52, 23  ;;  %v427_v43 = vshrl.u32 %v426_v17, 5 }
 0x101   : > { %v582_v32 = vsub.s32 %v578_v1, %v581_v26  ;;  %v1410_v36 = vadd.s32 %v1409_v35, %v1405_v30  ;;  %v432_v46 = vshrl.u32 %v2359_v53, %v429_v31  ;;  %v435_v40 = vshrl.u32 %v2360_v55, %v429_v31 }
 0x102   : > { %v438_v48 = vshrl.u32 %v2361_v57, %v429_v31  ;;  %v441_v50 = vshrl.u32 %v2362_v59, %v429_v31  ;;  %v604_v54 = vsub.s32 4, %v580_v22  ;;  %v431_v58 = vshll.u32 %v2358_v49, %v428_v25 }
 0x103   : > { %v584_v45 = vsub.s32 0, %v582_v32  ;;  %v1411_v47 = vadd.s32 536870912, %v1410_v36  ;;  %v434_v60 = vshll.u32 %v2359_v53, %v428_v25  ;;  %v437_v51 = vshll.u32 %v2360_v55, %v428_v25 }
 0x104   : > { %v440_v44 = vshll.u32 %v2361_v57, %v428_v25  ;;  %v444_v62 = vshrl.u32 %v2363_v2, %v429_v31  ;;  %v574_v0 = vadd.s32 %v2530_v34, %v2527_v33  ;;  %v433_v3 = vor.u32 %v432_v46, %v431_v58 }
 0x105   : > { %v2004_v42 = vmin.u32 %v584_v45, %v582_v32  ;;  %v2585_v56 = vshrl.u32 %v1411_v47, 30  ;;  %v436_v4 = vor.u32 %v435_v40, %v434_v60  ;;  %v439_v6 = vor.u32 %v438_v48, %v437_v51 }
 0x106   : > { %v442_v7 = vor.u32 %v441_v50, %v440_v44  ;;  %v443_v8 = vshll.u32 %v2362_v59, %v428_v25  ;;  %v605_v9 = vsel %vm520_vm15, %v604_v54, %v580_v22  ;;  %v430_v21 = vshrl.u32 %v2358_v49, %v429_v31 }
 0x107   : > { %v586_v61 = vclz %v2004_v42  ;;  %v1413_v1 = vshll.u32 %v2585_v56, 30  ;;  %vm446_vm1 = vcmp.lt.s32.totalorder %v427_v43, 1  ;;  %vm447_vm3 = vcmp.lt.s32.totalorder %v427_v43, 2 }
 0x108   : > { %v445_v11 = vor.u32 %v444_v62, %v443_v8  ;;  %vm448_vm4 = vcmp.lt.s32.totalorder %v427_v43, 3  ;;  %vm449_vm5 = vcmp.lt.s32.totalorder %v427_v43, 4  ;;  %v454_v13 = vsel %vm446_vm1, %v433_v3, %v436_v4 }
 0x109   : > { %v2005_v5 = vadd.s32 4294967294, %v586_v61  ;;  %v2604_v10 = vsub.s32 %v1410_v36, %v1413_v1  ;;  %v451_v24 = vsel %vm449_vm5, %v439_v6, 2102212464  ;;  %v455_v25 = vsel %vm449_vm5, %v442_v7, 920167782 }
 0x10a   : > { %v456_v28 = vsel %vm448_vm4, %v439_v6, %v455_v25  ;;  %v458_v29 = vsel %vm446_vm1, %v436_v4, %v439_v6  ;;  %v459_v35 = vsel %vm449_vm5, %v445_v11, 1326507024  ;;  %vm1352_vm6 = vcmp.lt.s32.totalorder %v2477_v19, 0 }
 0x10b   : > { %vm2006_vm2 = vcmp.lt.s32.totalorder %v2005_v5, 0  ;;  %v1416_v34 = vsub.s32 0, %v2604_v10  ;;  %v457_v52 = vsel %vm447_vm3, %v454_v13, %v456_v28  ;;  %v450_v45 = vsel %vm446_vm1, %v430_v21, %v433_v3 }
 0x10c   : > { %v589_v33 = vsel %vm2006_vm2, 0, %v2005_v5  ;;  %v452_v47 = vsel %vm448_vm4, %v436_v4, %v451_v24  ;;  %v2031_v46 = vadd.s32 4294967169, %v1250_v41  ;;  %v607_v42 = vsel %vm2594_vm0, 0, %v605_v9 }
 0x10d   : > { %v590_v14 = vsub.s32 32, %v589_v33  ;;  %v594_v17 = vsub.s32 4294967266, %v589_v33  ;;  %v591_v22 = vshll.u32 %v582_v32, %v589_v33  ;;  %v2036_v26 = vmin.u32 %v1416_v34, %v2604_v10 }
 0x10e   : > { %v460_v48 = vsel %vm448_vm4, %v442_v7, %v459_v35  ;;  %v2621_v58 = vmul.u32.u64.low %v2578_v38, %v457_v52  ;;  %v2622_v60 = vmul.u32.u64.high %v2578_v38, %v457_v52, %v2621_v58  ;;  %vm2627_vm7 = vcmp.le.f32.partialorder %v1350_v23, 0.7853982 }
 0x10f   : > { %v592_v30 = vshrl.u32 %v574_v0, %v590_v14  ;;  %v595_v31 = vadd.s32 127, %v594_v17  ;;  %v1418_v36 = vclz %v2036_v26  ;;  %v461_v54 = vsel %vm447_vm3, %v458_v29, %v460_v48 }
 0x110   : > { %v453_v51 = vsel %vm447_vm3, %v450_v45, %v452_v47  ;;  %v2633_v44 = vmul.u32.u64.low %v2578_v38, %v461_v54  ;;  %v2634_v62 = vmul.u32.u64.high %v2578_v38, %v461_v54, %v2633_v44  ;;  %v611_v0 = vadd.s32 3, %v607_v42 }
 0x111   : > { %v593_v32 = vor.u32 %v592_v30, %v591_v22  ;;  %v596_v40 = vshll.u32 %v595_v31, 23  ;;  %v2037_v50 = vadd.s32 4294967294, %v1418_v36  ;;  %v1406_v1 = vadd.s32 %v2556_v12, %v2562_v16  ;;  %v2085_v12 = vpop.f32.mrf.mxu0 }
 0x112   : > { %v1256_v3 = vadd.s32 1, %v2031_v46  ;;  %v1436_v23 = vsub.s32 4, %v2585_v56  ;;  %v469_v43 = vmul.u32 %v2578_v38, %v453_v51  ;;  %v472_v9 = vadd.s32 1, %v2622_v60 }
 0x113   : > { %v597_v61 = vor.u32 4788187, %v596_v40  ;;  %vm2038_vm8 = vcmp.lt.s32.totalorder %v2037_v50, 0  ;;  %v600_v5 = vcvt.s32.f32 %v593_v32  ;;  %vm471_vm9 = vc.u32 %v2634_v62, %v2621_v58 }
 0x114   : > { %v1421_v6 = vsel %vm2038_vm8, 0, %v2037_v50  ;;  %vm1257_vm10 = vcmp.gt.s32.totalorder %v1256_v3, 0  ;;  %v473_v34 = vsel %vm471_vm9, %v472_v9, %v2622_v60  ;;  %v1437_v38 = vsel %vm1352_vm6, %v1436_v23, %v2585_v56 }
 0x115   : > { %v598_v4 = vand.u32 2147483647, %v597_v61  ;;  %v1422_v7 = vsub.s32 32, %v1421_v6  ;;  %v1426_v8 = vsub.s32 4294967266, %v1421_v6  ;;  %v1423_v11 = vshll.u32 %v2604_v10, %v1421_v6 }
 0x116   : > { %v1258_v13 = vsel %vm1257_vm10, %v1256_v3, 0  ;;  %v474_v17 = vadd.s32 %v473_v34, %v469_v43  ;;  %v1253_v10 = vand.u32 8388607, %v1246_v39  ;;  %v2651_v26 = vadd.f32 %v2085_v12, %v2471_v15 }
 0x117   : > { %v601_v21 = vmul.f32 %v600_v5, %v598_v4  ;;  %v1424_v16 = vshrl.u32 %v1406_v1, %v1422_v7  ;;  %v1427_v33 = vadd.s32 127, %v1426_v8  ;;  %v1260_v24 = vand.u32 31, %v1258_v13 }
 0x118   : > { %v2655_v29 = vand.u32 3, %v611_v0  ;;  %v475_v30 = vadd.s32 536870912, %v474_v17  ;;  %v1439_v35 = vsel %vm2627_vm7, 0, %v1437_v38  ;;  %vm416_vm11 = vcmp.lt.s32.totalorder %v2486_v27, 0 }
 0x119   : > { %v602_v14 = vxor.u32 2147483648, %v601_v21  ;;  %v1425_v25 = vor.u32 %v1424_v16, %v1423_v11  ;;  %v1428_v22 = vshll.u32 %v1427_v33, 23  ;;  %v1261_v31 = vsub.s32 32, %v1260_v24 }
 0x11a   : > { %v1263_v36 = vshll.u32 %v2358_v49, %v1260_v24  ;;  %v476_v47 = vshrl.u32 %v475_v30, 30  ;;  %v1266_v40 = vshll.u32 %v2359_v53, %v1260_v24  ;;  %v2666_v48 = vadd.s32 3, %v1439_v35 }
 0x11b   : > { %v603_v28 = vsel %vm520_vm15, %v602_v14, %v601_v21  ;;  %v1429_v52 = vor.u32 4788187, %v1428_v22  ;;  %v1432_v45 = vcvt.s32.f32 %v1425_v25  ;;  %v1264_v46 = vshrl.u32 %v2359_v53, %v1261_v31 }
 0x11c   : > { %v606_v56 = vsel %vm2594_vm0, %v2474_v18, %v603_v28  ;;  %v1267_v42 = vshrl.u32 %v2360_v55, %v1261_v31  ;;  %v477_v63 = vshll.u32 %v476_v47, 30  ;;  %v1269_v50 = vshll.u32 %v2360_v55, %v1260_v24 }
 0x11d   : > { %2222 = vcosq.f32 %v606_v56  ;;  %v1430_v32 = vand.u32 2147483647, %v1429_v52  ;;  %v1270_v54 = vshrl.u32 %v2361_v57, %v1261_v31  ;;  %v2671_v61 = vshrl.u32 %v1258_v13, 5 }
 0x11e   : > { %2224 = vsinq.f32 %v606_v56  ;;  %v1272_v51 = vshll.u32 %v2361_v57, %v1260_v24  ;;  %v1273_v44 = vshrl.u32 %v2362_v59, %v1261_v31  ;;  %v2675_v0 = vsub.s32 %v474_v17, %v477_v63 }
 0x11f   : > { %v1433_v60 = vmul.f32 %v1432_v45, %v1430_v32  ;;  %v1254_v1 = vor.u32 8388608, %v1253_v10  ;;  %v1265_v3 = vor.u32 %v1264_v46, %v1263_v36  ;;  %v1275_v4 = vshll.u32 %v2362_v59, %v1260_v24 }
 0x120   : > { %v1268_v6 = vor.u32 %v1267_v42, %v1266_v40  ;;  %v1274_v23 = vor.u32 %v1273_v44, %v1272_v51  ;;  %v1276_v7 = vshrl.u32 %v2363_v2, %v1261_v31  ;;  %v470_v8 = vadd.s32 %v2621_v58, %v2634_v62 }
 0x121   : > { %v1434_v5 = vxor.u32 2147483648, %v1433_v60  ;;  %v480_v43 = vsub.s32 0, %v2675_v0  ;;  %v1271_v9 = vor.u32 %v1270_v54, %v1269_v50  ;;  %v729_v21 = vand.u32 2139095040, %v2651_v26 }
 0x122   : > { %vm617_vm12 = vcmp.eq.s32.totalorder %v2655_v29, 2  ;;  %v500_v12 = vsub.s32 4, %v476_v47  ;;  %v1262_v16 = vshrl.u32 %v2358_v49, %v1261_v31  ;;  %vm1278_vm13 = vcmp.lt.s32.totalorder %v2671_v61, 1 }
 0x123   : > { %v1435_v11 = vsel %vm1352_vm6, %v1434_v5, %v1433_v60  ;;  %vm614_vm14 = vcmp.eq.s32.totalorder %v2655_v29, 0  ;;  %v2000_v62 = vmin.u32 %v480_v43, %v2675_v0  ;;  %v1277_v33 = vor.u32 %v1276_v7, %v1275_v4 }
 0x124   : > { %v1438_v58 = vsel %vm2627_vm7, %v2477_v19, %v1435_v11  ;;  %vm1281_vm15 = vcmp.lt.s32.totalorder %v2671_v61, 4  ;;  %vm613_vm0 = vcmp.lt.s32.totalorder %v2655_v29, 2  ;;  %v1286_v34 = vsel %vm1278_vm13, %v1265_v3, %v1268_v6 }
 0x125   : > { %2226 = vcosq.f32 %v1438_v58  ;;  %v1287_v13 = vsel %vm1281_vm15, %v1274_v23, 920167782  ;;  %v1294_v14 = vshll.u32 %v1254_v1, 8  ;;  %vm610_vm1 = vweird.f32 %v2474_v18 }
 0x126   : > { %2228 = vsinq.f32 %v1438_v58  ;;  %vm2702_vm2 = vcmp.le.f32.partialorder %v414_v37, 0.7853982  ;;  %v482_v38 = vclz %v2000_v62  ;;  %vm1280_vm3 = vcmp.lt.s32.totalorder %v2671_v61, 3 }
 0x127   : > { %v1283_v17 = vsel %vm1281_vm15, %v1271_v9, 2102212464  ;;  %v501_v24 = vsel %vm416_vm11, %v500_v12, %v476_v47  ;;  %vm1279_vm4 = vcmp.lt.s32.totalorder %v2671_v61, 2  ;;  %v1288_v25 = vsel %vm1280_vm3, %v1271_v9, %v1287_v13 }
 0x128   : > { %v1290_v22 = vsel %vm1278_vm13, %v1268_v6, %v1271_v9  ;;  %v2001_v10 = vadd.s32 4294967294, %v482_v38  ;;  %v1282_v37 = vsel %vm1278_vm13, %v1262_v16, %v1265_v3  ;;  %v1289_v28 = vsel %vm1279_vm4, %v1286_v34, %v1288_v25 }
 0x129   : > { %v1291_v30 = vsel %vm1281_vm15, %v1277_v33, 1326507024  ;;  %v1284_v56 = vsel %vm1280_vm3, %v1268_v6, %v1283_v17  ;;  %v2724_v35 = vmul.u32.u64.low %v1294_v14, %v1289_v28  ;;  %v2725_v36 = vmul.u32.u64.high %v1294_v14, %v1289_v28, %v2724_v35 }
 0x12a   : > { %v2223_v31 = vpop.eup %2222  ;;  %v1292_v52 = vsel %vm1280_vm3, %v1274_v23, %v1291_v30  ;;  %vm2002_vm5 = vcmp.lt.s32.totalorder %v2001_v10, 0  ;;  %v730_v32 = vshrl.u32 %v729_v21, 23  ;;  %v1285_v44 = vsel %vm1279_vm4, %v1282_v37, %v1284_v56 }
 0x12b   : > { %v2225_v45 = vpop.eup %2224  ;;  %v618_v47 = vxor.u32 2147483648, %v2223_v31  ;;  %v1293_v46 = vsel %vm1279_vm4, %v1290_v22, %v1292_v52  ;;  %v485_v42 = vsel %vm2002_vm5, 0, %v2001_v10  ;;  %v1444_v3 = vand.u32 3, %v2666_v48  ;;  %v2097_v48 = vpop.f32.mrf.mxu1 }
 0x12c   : > { %v615_v40 = vxor.u32 2147483648, %v2225_v45  ;;  %v2730_v63 = vmul.u32.u64.low %v1294_v14, %v1293_v46  ;;  %v2731_v50 = vmul.u32.u64.high %v1294_v14, %v1293_v46, %v2730_v63  ;;  %v486_v60 = vsub.s32 32, %v485_v42 }
 0x12d   : > { %v619_v54 = vsel %vm617_vm12, %v618_v47, %v2225_v45  ;;  %v490_v51 = vsub.s32 4294967266, %v485_v42  ;;  %v1304_v4 = vadd.s32 1, %v2725_v36  ;;  %v2011_v5 = vadd.s32 4294967169, %v730_v32 }
 0x12e   : > { %v616_v1 = vsel %vm614_vm14, %v2223_v31, %v615_v40  ;;  %v487_v23 = vshll.u32 %v2675_v0, %v485_v42  ;;  %v488_v7 = vshrl.u32 %v470_v8, %v486_v60  ;;  %v503_v61 = vsel %vm2702_vm2, 0, %v501_v24 }
 0x12f   : > { %v620_v6 = vsel %vm613_vm0, %v616_v1, %v619_v54  ;;  %v491_v43 = vadd.s32 127, %v490_v51  ;;  %v1301_v21 = vmul.u32 %v1294_v14, %v1285_v44  ;;  %vm1303_vm6 = vc.u32 %v2731_v50, %v2724_v35 }
 0x130   : > { %v621_v9 = vsel %vm610_vm1, nan, %v620_v6  ;;  %v489_v29 = vor.u32 %v488_v7, %v487_v23  ;;  %v1305_v0 = vsel %vm1303_vm6, %v1304_v4, %v2725_v36  ;;  %v736_v8 = vadd.s32 1, %v2011_v5 }
 0x131   : > { %1871 = vst [vmem:[%s2751_s11 + $0x8] sm:$0xff] %v621_v9  ;;  %v492_v11 = vshll.u32 %v491_v43, 23  ;;  %v1306_v12 = vadd.s32 %v1305_v0, %v1301_v21  ;;  %v726_v18 = vand.u32 2147483647, %v2651_v26  ;;  %vm1449_vm7 = vcmp.eq.s32.totalorder %v1444_v3, 2 }
 0x132   : > { %v2227_v16 = vpop.eup %2226  ;;  %vm737_vm8 = vcmp.gt.s32.totalorder %v736_v8, 0  ;;  %v2757_v62 = vadd.f32 %v2097_v48, %v2471_v15  ;;  %v507_v13 = vadd.s32 3, %v503_v61  ;;  %v496_v25 = vcvt.s32.f32 %v489_v29 }
 0x133   : > { %v493_v58 = vor.u32 4788187, %v492_v11  ;;  %v2229_v33 = vpop.eup %2228  ;;  %v1450_v34 = vxor.u32 2147483648, %v2227_v16  ;;  %v1307_v14 = vadd.s32 536870912, %v1306_v12  ;;  %v738_v38 = vsel %vm737_vm8, %v736_v8, 0 }
 0x134   : > { %v1447_v17 = vxor.u32 2147483648, %v2229_v33  ;;  %v740_v22 = vand.u32 31, %v738_v38  ;;  %vm1446_vm9 = vcmp.eq.s32.totalorder %v1444_v3, 0  ;;  %v733_v28 = vand.u32 8388607, %v726_v18 }
 0x135   : > { %v494_v24 = vand.u32 2147483647, %v493_v58  ;;  %v1451_v10 = vsel %vm1449_vm7, %v1450_v34, %v2229_v33  ;;  %v2759_v37 = vshrl.u32 %v1307_v14, 30  ;;  %vm1445_vm10 = vcmp.lt.s32.totalorder %v1444_v3, 2 }
 0x136   : > { %v1448_v30 = vsel %vm1446_vm9, %v2227_v16, %v1447_v17  ;;  %v741_v56 = vsub.s32 32, %v740_v22  ;;  %vm1442_vm12 = vweird.f32 %v2477_v19  ;;  %v2765_v46 = vand.u32 3, %v507_v13 }
 0x137   : > { %v497_v31 = vmul.f32 %v496_v25, %v494_v24  ;;  %v1452_v52 = vsel %vm1445_vm10, %v1448_v30, %v1451_v10  ;;  %v1309_v36 = vshll.u32 %v2759_v37, 30  ;;  %v734_v42 = vor.u32 8388608, %v733_v28 }
 0x138   : > { %v1453_v45 = vsel %vm1442_vm12, nan, %v1452_v52  ;;  %v744_v32 = vshrl.u32 %v2359_v53, %v741_v56  ;;  %v747_v63 = vshrl.u32 %v2360_v55, %v741_v56  ;;  %v1561_v54 = vand.u32 2139095040, %v2757_v62 }
 0x139   : > { %v498_v47 = vxor.u32 2147483648, %v497_v31  ;;  %1879 = vst [vmem:[%s2751_s11 + $0x48] sm:$0xff] %v1453_v45  ;;  %v2769_v40 = vsub.s32 %v1306_v12, %v1309_v36  ;;  %v739_v60 = vshrl.u32 %v738_v38, 5  ;;  %v743_v51 = vshll.u32 %v2358_v49, %v740_v22 }
 0x13a   : > { %v750_v44 = vshrl.u32 %v2361_v57, %v741_v56  ;;  %v746_v4 = vshll.u32 %v2359_v53, %v740_v22  ;;  %v749_v5 = vshll.u32 %v2360_v55, %v740_v22  ;;  %v752_v23 = vshll.u32 %v2361_v57, %v740_v22 }
 0x13b   : > { %v499_v19 = vsel %vm416_vm11, %v498_v47, %v497_v31  ;;  %v1312_v3 = vsub.s32 0, %v2769_v40  ;;  %v745_v6 = vor.u32 %v744_v32, %v743_v51  ;;  %v753_v7 = vshrl.u32 %v2362_v59, %v741_v56 }
 0x13c   : > { %v502_v1 = vsel %vm2702_vm2, %v2486_v27, %v499_v19  ;;  %v748_v9 = vor.u32 %v747_v63, %v746_v4  ;;  %v751_v61 = vor.u32 %v750_v44, %v749_v5  ;;  %v755_v41 = vshll.u32 %v2362_v59, %v740_v22 }
 0x13d   : > { %2230 = vcosq.f32 %v502_v1  ;;  %v2032_v43 = vmin.u32 %v1312_v3, %v2769_v40  ;;  %v754_v21 = vor.u32 %v753_v7, %v752_v23  ;;  %v756_v48 = vshrl.u32 %v2363_v2, %v741_v56 }
 0x13e   : > { %2232 = vsinq.f32 %v502_v1  ;;  %v774_v29 = vshll.u32 %v734_v42, 8  ;;  %v742_v0 = vshrl.u32 %v2358_v49, %v741_v56  ;;  %vm758_vm11 = vcmp.lt.s32.totalorder %v739_v60, 1 }
 0x13f   : > { %v1314_v11 = vclz %v2032_v43  ;;  %v1562_v8 = vshrl.u32 %v1561_v54, 23  ;;  %vm1248_vm13 = vcmp.lt.s32.totalorder %v2566_v20, 0  ;;  %v757_v12 = vor.u32 %v756_v48, %v755_v41 }
 0x140   : > { %vm759_vm14 = vcmp.lt.s32.totalorder %v739_v60, 2  ;;  %vm760_vm15 = vcmp.lt.s32.totalorder %v739_v60, 3  ;;  %vm761_vm0 = vcmp.lt.s32.totalorder %v739_v60, 4  ;;  %v766_v33 = vsel %vm758_vm11, %v745_v6, %v748_v9 }
 0x141   : > { %v2033_v16 = vadd.s32 4294967294, %v1314_v11  ;;  %v763_v58 = vsel %vm761_vm0, %v751_v61, 2102212464  ;;  %v767_v34 = vsel %vm761_vm0, %v754_v21, 920167782  ;;  %v762_v13 = vsel %vm758_vm11, %v742_v0, %v745_v6 }
 0x142   : > { %v768_v14 = vsel %vm760_vm15, %v751_v61, %v767_v34  ;;  %v770_v38 = vsel %vm758_vm11, %v748_v9, %v751_v61  ;;  %v771_v17 = vsel %vm761_vm0, %v757_v12, 1326507024  ;;  %v764_v24 = vsel %vm760_vm15, %v748_v9, %v763_v58 }
 0x143   : > { %vm2034_vm1 = vcmp.lt.s32.totalorder %v2033_v16, 0  ;;  %v769_v25 = vsel %vm759_vm14, %v766_v33, %v768_v14  ;;  %v772_v22 = vsel %vm760_vm15, %v754_v21, %v771_v17  ;;  %v1302_v56 = vadd.s32 %v2724_v35, %v2731_v50  ;;  %v355_v17 = vpop.f32.mrf.mxu0 }
 0x144   : > { %v1317_v10 = vsel %vm2034_vm1, 0, %v2033_v16  ;;  %v773_v28 = vsel %vm759_vm14, %v770_v38, %v772_v22  ;;  %v2792_v30 = vmul.u32.u64.low %v774_v29, %v769_v25  ;;  %v2793_v31 = vmul.u32.u64.high %v774_v29, %v769_v25, %v2792_v30 }
 0x145   : > { %v1318_v52 = vsub.s32 32, %v1317_v10  ;;  %v1322_v36 = vsub.s32 4294967266, %v1317_v10  ;;  %v1332_v45 = vsub.s32 4, %v2759_v37  ;;  %vm2801_vm2 = vcmp.le.f32.partialorder %v1246_v39, 0.7853982 }
 0x146   : > { %v2805_v32 = vmul.u32.u64.low %v774_v29, %v773_v28  ;;  %v2806_v42 = vmul.u32.u64.high %v774_v29, %v773_v28, %v2805_v32  ;;  %v2043_v63 = vadd.s32 4294967169, %v1562_v8  ;;  %v1319_v54 = vshll.u32 %v2769_v40, %v1317_v10 }
 0x147   : > { %v1320_v19 = vshrl.u32 %v1302_v56, %v1318_v52  ;;  %v1323_v51 = vadd.s32 127, %v1322_v36  ;;  %v765_v35 = vsel %vm759_vm14, %v762_v13, %v764_v24  ;;  %vm509_vm3 = vcmp.lt.s32.totalorder %v2765_v46, 2 }
 0x148   : > { %vm510_vm4 = vcmp.eq.s32.totalorder %v2765_v46, 0  ;;  %v784_v50 = vadd.s32 1, %v2793_v31  ;;  %v1568_v39 = vadd.s32 1, %v2043_v63  ;;  %v1333_v4 = vsel %vm1248_vm13, %v1332_v45, %v2759_v37 }
 0x149   : > { %v1321_v1 = vor.u32 %v1320_v19, %v1319_v54  ;;  %v1324_v3 = vshll.u32 %v1323_v51, 23  ;;  %v1558_v40 = vand.u32 2147483647, %v2757_v62  ;;  %v781_v60 = vmul.u32 %v774_v29, %v765_v35 }
 0x14a   : > { %v2231_v44 = vpop.eup %2230  ;;  %vm783_vm5 = vc.u32 %v2806_v42, %v2792_v30  ;;  %vm1569_vm6 = vcmp.gt.s32.totalorder %v1568_v39, 0  ;;  %vm513_vm7 = vcmp.eq.s32.totalorder %v2765_v46, 2  ;;  %v1335_v37 = vsel %vm2801_vm2, 0, %v1333_v4 }
 0x14b   : > { %v2233_v5 = vpop.eup %2232  ;;  %v514_v6 = vxor.u32 2147483648, %v2231_v44  ;;  %v1325_v7 = vor.u32 4788187, %v1324_v3  ;;  %v785_v43 = vsel %vm783_vm5, %v784_v50, %v2793_v31  ;;  %v1570_v21 = vsel %vm1569_vm6, %v1568_v39, 0 }
 0x14c   : > { %v511_v23 = vxor.u32 2147483648, %v2233_v5  ;;  %v786_v61 = vadd.s32 %v785_v43, %v781_v60  ;;  %v1328_v29 = vcvt.s32.f32 %v1321_v1  ;;  %v1572_v11 = vand.u32 31, %v1570_v21 }
 0x14d   : > { %v515_v9 = vsel %vm513_vm7, %v514_v6, %v2233_v5  ;;  %v1326_v48 = vand.u32 2147483647, %v1325_v7  ;;  %vm506_vm8 = vweird.f32 %v2486_v27  ;;  %v1565_v12 = vand.u32 8388607, %v1558_v40 }
 0x14e   : > { %v512_v41 = vsel %vm510_vm4, %v2231_v44, %v511_v23  ;;  %v787_v8 = vadd.s32 536870912, %v786_v61  ;;  %v1339_v33 = vadd.s32 3, %v1335_v37  ;;  %v1573_v34 = vsub.s32 32, %v1572_v11 }
 0x14f   : > { %v516_v0 = vsel %vm509_vm3, %v512_v41, %v515_v9  ;;  %v1329_v58 = vmul.f32 %v1328_v29, %v1326_v48  ;;  %v1575_v14 = vshll.u32 %v2358_v49, %v1572_v11  ;;  %v1578_v38 = vshll.u32 %v2359_v53, %v1572_v11 }
 0x150   : > { %v517_v16 = vsel %vm506_vm8, nan, %v516_v0  ;;  %v2831_v13 = vshrl.u32 %v787_v8, 30  ;;  %v1581_v27 = vshll.u32 %v2360_v55, %v1572_v11  ;;  %v1576_v24 = vshrl.u32 %v2359_v53, %v1573_v34 }
 0x151   : > { %1870 = vst [vmem:[%s2751_s11] sm:$0xff] %v517_v16  ;;  %v1330_v46 = vxor.u32 2147483648, %v1329_v58  ;;  %v1579_v25 = vshrl.u32 %v2360_v55, %v1573_v34  ;;  %v1584_v22 = vshll.u32 %v2361_v57, %v1572_v11  ;;  %v1566_v28 = vor.u32 8388608, %v1565_v12 }
 0x152   : > { %v789_v10 = vshll.u32 %v2831_v13, 30  ;;  %v1582_v31 = vshrl.u32 %v2361_v57, %v1573_v34  ;;  %v1585_v56 = vshrl.u32 %v2362_v59, %v1573_v34  ;;  %v1571_v36 = vshrl.u32 %v1570_v21, 5 }
 0x153   : > { %v1331_v52 = vsel %vm1248_vm13, %v1330_v46, %v1329_v58  ;;  %v1587_v45 = vshll.u32 %v2362_v59, %v1572_v11  ;;  %v2846_v32 = vadd.f32 %v2471_v15, %v355_v17  ;;  %v1577_v19 = vor.u32 %v1576_v24, %v1575_v14 }
 0x154   : > { %v1334_v63 = vsel %vm2801_vm2, %v2566_v20, %v1331_v52  ;;  %v2851_v54 = vsub.s32 %v786_v61, %v789_v10  ;;  %v1583_v51 = vor.u32 %v1582_v31, %v1581_v27  ;;  %v1580_v35 = vor.u32 %v1579_v25, %v1578_v38 }
 0x155   : > { %2234 = vcosq.f32 %v1334_v63  ;;  %v1586_v50 = vor.u32 %v1585_v56, %v1584_v22  ;;  %v1588_v39 = vshrl.u32 %v2363_v2, %v1573_v34  ;;  %v1574_v1 = vshrl.u32 %v2358_v49, %v1573_v34 }
 0x156   : > { %2236 = vsinq.f32 %v1334_v63  ;;  %v792_v44 = vsub.s32 0, %v2851_v54  ;;  %vm1593_vm9 = vcmp.lt.s32.totalorder %v1571_v36, 4  ;;  %v625_v3 = vand.u32 2139095040, %v2846_v32 }
 0x157   : > { %v1589_v15 = vor.u32 %v1588_v39, %v1587_v45  ;;  %v2857_v47 = vand.u32 3, %v1339_v33  ;;  %vm1590_vm10 = vcmp.lt.s32.totalorder %v1571_v36, 1  ;;  %v1595_v5 = vsel %vm1593_vm9, %v1583_v51, 2102212464  ;;  %v395_v45 = vpop.f32.mrf.mxu1 }
 0x158   : > { %v2012_v4 = vmin.u32 %v792_v44, %v2851_v54  ;;  %vm1591_vm12 = vcmp.lt.s32.totalorder %v1571_v36, 2  ;;  %v1598_v6 = vsel %vm1590_vm10, %v1577_v19, %v1580_v35  ;;  %v1599_v60 = vsel %vm1593_vm9, %v1586_v50, 920167782 }
 0x159   : > { %v1606_v23 = vshll.u32 %v1566_v28, 8  ;;  %vm728_vm11 = vcmp.lt.s32.totalorder %v2651_v26, 0  ;;  %vm1592_vm13 = vcmp.lt.s32.totalorder %v1571_v36, 3  ;;  %v1594_v43 = vsel %vm1590_vm10, %v1574_v1, %v1577_v19 }
 0x15a   : > { %v794_v7 = vclz %v2012_v4  ;;  %v1602_v9 = vsel %vm1590_vm10, %v1580_v35, %v1583_v51  ;;  %v1596_v37 = vsel %vm1592_vm13, %v1580_v35, %v1595_v5  ;;  %v1600_v61 = vsel %vm1592_vm13, %v1583_v51, %v1599_v60 }
 0x15b   : > { %v1603_v21 = vsel %vm1593_vm9, %v1589_v15, 1326507024  ;;  %v626_v41 = vshrl.u32 %v625_v3, 23  ;;  %v1601_v29 = vsel %vm1591_vm12, %v1598_v6, %v1600_v61  ;;  %v622_v0 = vand.u32 2147483647, %v2846_v32 }
 0x15c   : > { %v2013_v48 = vadd.s32 4294967294, %v794_v7  ;;  %v1604_v11 = vsel %vm1592_vm13, %v1586_v50, %v1603_v21  ;;  %v2867_v12 = vmul.u32.u64.low %v1606_v23, %v1601_v29  ;;  %v2868_v16 = vmul.u32.u64.high %v1606_v23, %v1601_v29, %v2867_v12  ;;  %v2902_v15 = vld [vmem:[%s3502_s2] ss:$0 sm:$0xff] }
 0x15d   : > { %v1605_v8 = vsel %vm1591_vm12, %v1602_v9, %v1604_v11  ;;  %v2007_v58 = vadd.s32 4294967169, %v626_v41  ;;  %v1597_v33 = vsel %vm1591_vm12, %v1594_v43, %v1596_v37  ;;  %vm1338_vm15 = vweird.f32 %v2566_v20 }
 0x15e   : > { %vm2014_vm14 = vcmp.lt.s32.totalorder %v2013_v48, 0  ;;  %v2872_v34 = vmul.u32.u64.low %v1606_v23, %v1605_v8  ;;  %v2873_v14 = vmul.u32.u64.high %v1606_v23, %v1605_v8, %v2872_v34  ;;  %vm2878_vm0 = vcmp.le.f32.partialorder %v726_v18, 0.7853982 }
 0x15f   : > { %v797_v27 = vsel %vm2014_vm14, 0, %v2013_v48  ;;  %v812_v17 = vsub.s32 4, %v2831_v13  ;;  %v632_v46 = vadd.s32 1, %v2007_v58  ;;  %vm1345_vm1 = vcmp.eq.s32.totalorder %v2857_v47, 2 }
 0x160   : > { %v782_v24 = vadd.s32 %v2792_v30, %v2806_v42  ;;  %v798_v25 = vsub.s32 32, %v797_v27  ;;  %v802_v22 = vsub.s32 4294967266, %v797_v27  ;;  %v1613_v10 = vmul.u32 %v1606_v23, %v1597_v33 }
 0x161   : > { %v1616_v28 = vadd.s32 1, %v2868_v16  ;;  %v629_v18 = vand.u32 8388607, %v622_v0  ;;  %vm633_vm2 = vcmp.gt.s32.totalorder %v632_v46, 0  ;;  %v799_v56 = vshll.u32 %v2851_v54, %v797_v27 }
 0x162   : > { %v2235_v31 = vpop.eup %2234  ;;  %v800_v52 = vshrl.u32 %v782_v24, %v798_v25  ;;  %v803_v36 = vadd.s32 127, %v802_v22  ;;  %vm1615_vm3 = vc.u32 %v2873_v14, %v2867_v12  ;;  %v813_v42 = vsel %vm728_vm11, %v812_v17, %v2831_v13 }
 0x163   : > { %v2237_v63 = vpop.eup %2236  ;;  %v1346_v30 = vxor.u32 2147483648, %v2235_v31  ;;  %v1617_v19 = vsel %vm1615_vm3, %v1616_v28, %v2868_v16  ;;  %v634_v51 = vsel %vm633_vm2, %v632_v46, 0  ;;  %vm1342_vm4 = vcmp.eq.s32.totalorder %v2857_v47, 0 }
 0x164   : > { %v1343_v35 = vxor.u32 2147483648, %v2237_v63  ;;  %v801_v50 = vor.u32 %v800_v52, %v799_v56  ;;  %v804_v39 = vshll.u32 %v803_v36, 23  ;;  %v1618_v44 = vadd.s32 %v1617_v19, %v1613_v10 }
 0x165   : > { %v1347_v54 = vsel %vm1345_vm1, %v1346_v30, %v2237_v63  ;;  %v636_v1 = vand.u32 31, %v634_v51  ;;  %v2905_v13 = vadd.f32 %v2902_v15, %v395_v45  ;;  %vm1341_vm5 = vcmp.lt.s32.totalorder %v2857_v47, 2 }
 0x166   : > { %v1344_v3 = vsel %vm1342_vm4, %v2235_v31, %v1343_v35  ;;  %v805_v4 = vor.u32 4788187, %v804_v39  ;;  %v1619_v5 = vadd.s32 536870912, %v1618_v44  ;;  %v815_v60 = vsel %vm2878_vm0, 0, %v813_v42 }
 0x167   : > { %v1348_v6 = vsel %vm1341_vm5, %v1344_v3, %v1347_v54  ;;  %v630_v23 = vor.u32 8388608, %v629_v18  ;;  %v637_v7 = vsub.s32 32, %v636_v1  ;;  %v808_v37 = vcvt.s32.f32 %v801_v50 }
 0x168   : > { %v1349_v43 = vsel %vm1338_vm15, nan, %v1348_v6  ;;  %v806_v9 = vand.u32 2147483647, %v805_v4  ;;  %v2912_v61 = vshrl.u32 %v1619_v5, 30  ;;  %v1457_v48 = vand.u32 2139095040, %v2905_v13 }
 0x169   : > { %1878 = vst [vmem:[%s2751_s11 + $0x40] sm:$0xff] %v1349_v43  ;;  %v640_v21 = vshrl.u32 %v2359_v53, %v637_v7  ;;  %v643_v47 = vshrl.u32 %v2360_v55, %v637_v7  ;;  %v646_v41 = vshrl.u32 %v2361_v57, %v637_v7  ;;  %v639_v8 = vshll.u32 %v2358_v49, %v636_v1 }
 0x16a   : > { %v809_v29 = vmul.f32 %v808_v37, %v806_v9  ;;  %v1621_v11 = vshll.u32 %v2912_v61, 30  ;;  %v642_v20 = vshll.u32 %v2359_v53, %v636_v1  ;;  %v635_v16 = vshrl.u32 %v634_v51, 5 }
 0x16b   : > { %v645_v58 = vshll.u32 %v2360_v55, %v636_v1  ;;  %v648_v33 = vshll.u32 %v2361_v57, %v636_v1  ;;  %v649_v34 = vshrl.u32 %v2362_v59, %v637_v7  ;;  %v641_v46 = vor.u32 %v640_v21, %v639_v8 }
 0x16c   : > { %v810_v27 = vxor.u32 2147483648, %v809_v29  ;;  %v2925_v17 = vsub.s32 %v1618_v44, %v1621_v11  ;;  %v644_v24 = vor.u32 %v643_v47, %v642_v20  ;;  %v651_v10 = vshll.u32 %v2362_v59, %v636_v1 }
 0x16d   : > { %v647_v25 = vor.u32 %v646_v41, %v645_v58  ;;  %v650_v22 = vor.u32 %v649_v34, %v648_v33  ;;  %v652_v28 = vshrl.u32 %v2363_v2, %v637_v7  ;;  %v819_v31 = vadd.s32 3, %v815_v60 }
 0x16e   : > { %v811_v18 = vsel %vm728_vm11, %v810_v27, %v809_v29  ;;  %v1624_v56 = vsub.s32 0, %v2925_v17  ;;  %v670_v52 = vshll.u32 %v630_v23, 8  ;;  %v638_v45 = vshrl.u32 %v2358_v49, %v637_v7 }
 0x16f   : > { %v814_v36 = vsel %vm2878_vm0, %v2651_v26, %v811_v18  ;;  %v653_v63 = vor.u32 %v652_v28, %v651_v10  ;;  %v1458_v30 = vshrl.u32 %v1457_v48, 23  ;;  %vm654_vm6 = vcmp.lt.s32.totalorder %v635_v16, 1 }
 0x170   : > { %2238 = vcosq.f32 %v814_v36  ;;  %v2044_v42 = vmin.u32 %v1624_v56, %v2925_v17  ;;  %vm657_vm7 = vcmp.lt.s32.totalorder %v635_v16, 4  ;;  %v662_v51 = vsel %vm654_vm6, %v641_v46, %v644_v24 }
 0x171   : > { %2240 = vsinq.f32 %v814_v36  ;;  %v659_v19 = vsel %vm657_vm7, %v647_v25, 2102212464  ;;  %v663_v35 = vsel %vm657_vm7, %v650_v22, 920167782  ;;  %vm655_vm8 = vcmp.lt.s32.totalorder %v635_v16, 2 }
 0x172   : > { %v1626_v50 = vclz %v2044_v42  ;;  %vm656_vm9 = vcmp.lt.s32.totalorder %v635_v16, 3  ;;  %v658_v39 = vsel %vm654_vm6, %v638_v45, %v641_v46  ;;  %v666_v54 = vsel %vm654_vm6, %v644_v24, %v647_v25 }
 0x173   : > { %v660_v44 = vsel %vm656_vm9, %v644_v24, %v659_v19  ;;  %v664_v38 = vsel %vm656_vm9, %v647_v25, %v663_v35  ;;  %v667_v1 = vsel %vm657_vm7, %v653_v63, 1326507024  ;;  %v1644_v4 = vsub.s32 4, %v2912_v61 }
 0x174   : > { %v2045_v3 = vadd.s32 4294967294, %v1626_v50  ;;  %v665_v5 = vsel %vm655_vm8, %v662_v51, %v664_v38  ;;  %v668_v6 = vsel %vm656_vm9, %v650_v22, %v667_v1  ;;  %v661_v60 = vsel %vm655_vm8, %v658_v39, %v660_v44 }
 0x175   : > { %v669_v23 = vsel %vm655_vm8, %v666_v54, %v668_v6  ;;  %v2938_v7 = vmul.u32.u64.low %v670_v52, %v665_v5  ;;  %v2939_v43 = vmul.u32.u64.high %v670_v52, %v665_v5, %v2938_v7  ;;  %v2039_v21 = vadd.s32 4294967169, %v1458_v30 }
 0x176   : > { %vm2046_vm10 = vcmp.lt.s32.totalorder %v2045_v3, 0  ;;  %v2942_v9 = vmul.u32.u64.low %v670_v52, %v669_v23  ;;  %v2943_v37 = vmul.u32.u64.high %v670_v52, %v669_v23, %v2942_v9  ;;  %vm1560_vm12 = vcmp.lt.s32.totalorder %v2757_v62, 0 }
 0x177   : > { %v1614_v47 = vadd.s32 %v2867_v12, %v2873_v14  ;;  %v1629_v41 = vsel %vm2046_vm10, 0, %v2045_v3  ;;  %v1645_v11 = vsel %vm1560_vm12, %v1644_v4, %v2912_v61  ;;  %v1464_v8 = vadd.s32 1, %v2039_v21 }
 0x178   : > { %v1630_v48 = vsub.s32 32, %v1629_v41  ;;  %v1634_v29 = vsub.s32 4294967266, %v1629_v41  ;;  %v820_v20 = vand.u32 3, %v819_v31  ;;  %vm2953_vm11 = vcmp.le.f32.partialorder %v1558_v40, 0.7853982 }
 0x179   : > { %v677_v58 = vmul.u32 %v670_v52, %v661_v60  ;;  %v680_v33 = vadd.s32 1, %v2939_v43  ;;  %v1631_v12 = vshll.u32 %v2925_v17, %v1629_v41  ;;  %vm679_vm13 = vc.u32 %v2943_v37, %v2938_v7  ;;  %v2088_v52 = vpop.f32.mrf.mxu0 }
 0x17a   : > { %v1632_v14 = vshrl.u32 %v1614_v47, %v1630_v48  ;;  %v1635_v34 = vadd.s32 127, %v1634_v29  ;;  %v1647_v61 = vsel %vm2953_vm11, 0, %v1645_v11  ;;  %v1454_v40 = vand.u32 2147483647, %v2905_v13 }
 0x17b   : > { %v681_v27 = vsel %vm679_vm13, %v680_v33, %v2939_v43  ;;  %vm1465_vm14 = vcmp.gt.s32.totalorder %v1464_v8, 0  ;;  %vm818_vm15 = vweird.f32 %v2651_v26  ;;  %vm821_vm0 = vcmp.lt.s32.totalorder %v820_v20, 2 }
 0x17c   : > { %v1633_v46 = vor.u32 %v1632_v14, %v1631_v12  ;;  %v1636_v24 = vshll.u32 %v1635_v34, 23  ;;  %v682_v25 = vadd.s32 %v681_v27, %v677_v58  ;;  %v1466_v22 = vsel %vm1465_vm14, %v1464_v8, 0 }
 0x17d   : > { %v2239_v10 = vpop.eup %2238  ;;  %vm822_vm1 = vcmp.eq.s32.totalorder %v820_v20, 0  ;;  %v1468_v17 = vand.u32 31, %v1466_v22  ;;  %vm825_vm2 = vcmp.eq.s32.totalorder %v820_v20, 2  ;;  %v2966_v45 = vadd.s32 3, %v1647_v61 }
 0x17e   : > { %v2241_v28 = vpop.eup %2240  ;;  %v826_v18 = vxor.u32 2147483648, %v2239_v10  ;;  %v1637_v31 = vor.u32 4788187, %v1636_v24  ;;  %v683_v56 = vadd.s32 536870912, %v682_v25  ;;  %v1461_v63 = vand.u32 8388607, %v1454_v40 }
 0x17f   : > { %v823_v36 = vxor.u32 2147483648, %v2241_v28  ;;  %v1469_v30 = vsub.s32 32, %v1468_v17  ;;  %v1640_v51 = vcvt.s32.f32 %v1633_v46  ;;  %v1471_v39 = vshll.u32 %v2358_v49, %v1468_v17 }
 0x180   : > { %v827_v42 = vsel %vm825_vm2, %v826_v18, %v2241_v28  ;;  %v1638_v19 = vand.u32 2147483647, %v1637_v31  ;;  %v2970_v35 = vshrl.u32 %v683_v56, 30  ;;  %v1474_v44 = vshll.u32 %v2359_v53, %v1468_v17 }
 0x181   : > { %v824_v50 = vsel %vm822_vm1, %v2239_v10, %v823_v36  ;;  %v2976_v38 = vadd.f32 %v2902_v15, %v2088_v52  ;;  %v1472_v4 = vshrl.u32 %v2359_v53, %v1469_v30  ;;  %v1475_v6 = vshrl.u32 %v2360_v55, %v1469_v30 }
 0x182   : > { %v828_v54 = vsel %vm821_vm0, %v824_v50, %v827_v42  ;;  %v1641_v1 = vmul.f32 %v1640_v51, %v1638_v19  ;;  %v685_v3 = vshll.u32 %v2970_v35, 30  ;;  %v1477_v60 = vshll.u32 %v2360_v55, %v1468_v17 }
 0x183   : > { %v829_v5 = vsel %vm818_vm15, nan, %v828_v54  ;;  %v1478_v23 = vshrl.u32 %v2361_v57, %v1469_v30  ;;  %v1462_v21 = vor.u32 8388608, %v1461_v63  ;;  %v1480_v47 = vshll.u32 %v2361_v57, %v1468_v17 }
 0x184   : > { %1873 = vst [vmem:[%s2751_s11 + $0x18] sm:$0xff] %v829_v5  ;;  %v1642_v43 = vxor.u32 2147483648, %v1641_v1  ;;  %v2987_v9 = vsub.s32 %v682_v25, %v685_v3  ;;  %v678_v41 = vadd.s32 %v2938_v7, %v2943_v37  ;;  %v1467_v48 = vshrl.u32 %v1466_v22, 5 }
 0x185   : > { %v1481_v26 = vshrl.u32 %v2362_v59, %v1469_v30  ;;  %v1483_v29 = vshll.u32 %v2362_v59, %v1468_v17  ;;  %v1473_v20 = vor.u32 %v1472_v4, %v1471_v39  ;;  %v1484_v58 = vshrl.u32 %v2363_v2, %v1469_v30 }
 0x186   : > { %v1643_v11 = vsel %vm1560_vm12, %v1642_v43, %v1641_v1  ;;  %v688_v8 = vsub.s32 0, %v2987_v9  ;;  %v1476_v12 = vor.u32 %v1475_v6, %v1474_v44  ;;  %v1479_v14 = vor.u32 %v1478_v23, %v1477_v60 }
 0x187   : > { %v1646_v33 = vsel %vm2953_vm11, %v2757_v62, %v1643_v11  ;;  %v1482_v7 = vor.u32 %v1481_v26, %v1480_v47  ;;  %v1470_v34 = vshrl.u32 %v2358_v49, %v1469_v30  ;;  %v1485_v61 = vor.u32 %v1484_v58, %v1483_v29 }
 0x188   : > { %2242 = vcosq.f32 %v1646_v33  ;;  %v2008_v37 = vmin.u32 %v688_v8, %v2987_v9  ;;  %vm1486_vm3 = vcmp.lt.s32.totalorder %v1467_v48, 1  ;;  %v1502_v27 = vshll.u32 %v1462_v21, 8 }
 0x189   : > { %2244 = vsinq.f32 %v1646_v33  ;;  %v937_v46 = vand.u32 2139095040, %v2976_v38  ;;  %vm1487_vm4 = vcmp.lt.s32.totalorder %v1467_v48, 2  ;;  %vm1488_vm5 = vcmp.lt.s32.totalorder %v1467_v48, 3 }
 0x18a   : > { %v690_v24 = vclz %v2008_v37  ;;  %vm1489_vm6 = vcmp.lt.s32.totalorder %v1467_v48, 4  ;;  %v1494_v25 = vsel %vm1486_vm3, %v1473_v20, %v1476_v12  ;;  %v1498_v10 = vsel %vm1486_vm3, %v1476_v12, %v1479_v14 }
 0x18b   : > { %v1491_v16 = vsel %vm1489_vm6, %v1479_v14, 2102212464  ;;  %v1495_v22 = vsel %vm1489_vm6, %v1482_v7, 920167782  ;;  %v1490_v28 = vsel %vm1486_vm3, %v1470_v34, %v1473_v20  ;;  %v1499_v31 = vsel %vm1489_vm6, %v1485_v61, 1326507024 }
 0x18c   : > { %v2009_v17 = vadd.s32 4294967294, %v690_v24  ;;  %v1496_v18 = vsel %vm1488_vm5, %v1479_v14, %v1495_v22  ;;  %v1492_v56 = vsel %vm1488_vm5, %v1476_v12, %v1491_v16  ;;  %v1500_v36 = vsel %vm1488_vm5, %v1482_v7, %v1499_v31 }
 0x18d   : > { %v1497_v52 = vsel %vm1487_vm4, %v1494_v25, %v1496_v18  ;;  %v938_v63 = vshrl.u32 %v937_v46, 23  ;;  %v1501_v30 = vsel %vm1487_vm4, %v1498_v10, %v1500_v36  ;;  %v708_v50 = vsub.s32 4, %v2970_v35  ;;  %v2100_v46 = vpop.f32.mrf.mxu1 }
 0x18e   : > { %vm2010_vm7 = vcmp.lt.s32.totalorder %v2009_v17, 0  ;;  %v3006_v42 = vmul.u32.u64.low %v1502_v27, %v1497_v52  ;;  %v3007_v19 = vmul.u32.u64.high %v1502_v27, %v1497_v52, %v3006_v42  ;;  %v1493_v3 = vsel %vm1487_vm4, %v1490_v28, %v1492_v56 }
 0x18f   : > { %v693_v51 = vsel %vm2010_vm7, 0, %v2009_v17  ;;  %v3011_v39 = vmul.u32.u64.low %v1502_v27, %v1501_v30  ;;  %v3012_v44 = vmul.u32.u64.high %v1502_v27, %v1501_v30, %v3011_v39  ;;  %v2019_v4 = vadd.s32 4294967169, %v938_v63 }
 0x190   : > { %v694_v54 = vsub.s32 32, %v693_v51  ;;  %v698_v1 = vsub.s32 4294967266, %v693_v51  ;;  %v1652_v5 = vand.u32 3, %v2966_v45  ;;  %vm624_vm8 = vcmp.lt.s32.totalorder %v2846_v32, 0 }
 0x191   : > { %v695_v6 = vshll.u32 %v2987_v9, %v693_v51  ;;  %v934_v60 = vand.u32 2147483647, %v2976_v38  ;;  %v1512_v21 = vadd.s32 1, %v3007_v19  ;;  %v944_v47 = vadd.s32 1, %v2019_v4 }
 0x192   : > { %v696_v23 = vshrl.u32 %v678_v41, %v694_v54  ;;  %v699_v43 = vadd.s32 127, %v698_v1  ;;  %v709_v26 = vsel %vm624_vm8, %v708_v50, %v2970_v35  ;;  %v1509_v48 = vmul.u32 %v1502_v27, %v1493_v3 }
 0x193   : > { %vm1511_vm9 = vc.u32 %v3012_v44, %v3006_v42  ;;  %vm945_vm10 = vcmp.gt.s32.totalorder %v944_v47, 0  ;;  %vm1650_vm12 = vweird.f32 %v2757_v62  ;;  %vm3029_vm11 = vcmp.le.f32.partialorder %v622_v0, 0.7853982 }
 0x194   : > { %v697_v45 = vor.u32 %v696_v23, %v695_v6  ;;  %v700_v29 = vshll.u32 %v699_v43, 23  ;;  %v1513_v11 = vsel %vm1511_vm9, %v1512_v21, %v3007_v19  ;;  %v946_v35 = vsel %vm945_vm10, %v944_v47, 0 }
 0x195   : > { %v2243_v9 = vpop.eup %2242  ;;  %v1514_v8 = vadd.s32 %v1513_v11, %v1509_v48  ;;  %vm1657_vm13 = vcmp.eq.s32.totalorder %v1652_v5, 2  ;;  %v941_v12 = vand.u32 8388607, %v934_v60  ;;  %v711_v7 = vsel %vm3029_vm11, 0, %v709_v26 }
 0x196   : > { %v2245_v20 = vpop.eup %2244  ;;  %v1658_v58 = vxor.u32 2147483648, %v2243_v9  ;;  %v701_v33 = vor.u32 4788187, %v700_v29  ;;  %v948_v34 = vand.u32 31, %v946_v35  ;;  %vm1654_vm14 = vcmp.eq.s32.totalorder %v1652_v5, 0 }
 0x197   : > { %v1655_v14 = vxor.u32 2147483648, %v2245_v20  ;;  %v1515_v37 = vadd.s32 536870912, %v1514_v8  ;;  %v704_v27 = vcvt.s32.f32 %v697_v45  ;;  %vm1653_vm15 = vcmp.lt.s32.totalorder %v1652_v5, 2 }
 0x198   : > { %v1659_v0 = vsel %vm1657_vm13, %v1658_v58, %v2245_v20  ;;  %v702_v61 = vand.u32 2147483647, %v701_v33  ;;  %v949_v25 = vsub.s32 32, %v948_v34  ;;  %v715_v17 = vadd.s32 3, %v711_v7 }
 0x199   : > { %v1656_v24 = vsel %vm1654_vm14, %v2243_v9, %v1655_v14  ;;  %v3037_v16 = vshrl.u32 %v1515_v37, 30  ;;  %v942_v28 = vor.u32 8388608, %v941_v12  ;;  %v951_v56 = vshll.u32 %v2358_v49, %v948_v34 }
 0x19a   : > { %v1660_v22 = vsel %vm1653_vm15, %v1656_v24, %v1659_v0  ;;  %v705_v10 = vmul.f32 %v704_v27, %v702_v61  ;;  %v3044_v52 = vadd.f32 %v2902_v15, %v2100_v46  ;;  %v952_v63 = vshrl.u32 %v2359_v53, %v949_v25 }
 0x19b   : > { %v1661_v18 = vsel %vm1650_vm12, nan, %v1660_v22  ;;  %v1517_v31 = vshll.u32 %v3037_v16, 30  ;;  %v955_v30 = vshrl.u32 %v2360_v55, %v949_v25  ;;  %v958_v19 = vshrl.u32 %v2361_v57, %v949_v25 }
 0x19c   : > { %1881 = vst [vmem:[%s2751_s11 + $0x58] sm:$0xff] %v1661_v18  ;;  %v706_v36 = vxor.u32 2147483648, %v705_v10  ;;  %v954_v62 = vshll.u32 %v2359_v53, %v948_v34  ;;  %v957_v50 = vshll.u32 %v2360_v55, %v948_v34  ;;  %v961_v39 = vshrl.u32 %v2362_v59, %v949_v25 }
 0x19d   : > { %v3050_v51 = vsub.s32 %v1514_v8, %v1517_v31  ;;  %v947_v1 = vshrl.u32 %v946_v35, 5  ;;  %v953_v3 = vor.u32 %v952_v63, %v951_v56  ;;  %v960_v4 = vshll.u32 %v2361_v57, %v948_v34 }
 0x19e   : > { %v707_v54 = vsel %vm624_vm8, %v706_v36, %v705_v10  ;;  %v956_v23 = vor.u32 %v955_v30, %v954_v62  ;;  %v959_v43 = vor.u32 %v958_v19, %v957_v50  ;;  %v963_v47 = vshll.u32 %v2362_v59, %v948_v34 }
 0x19f   : > { %v710_v5 = vsel %vm3029_vm11, %v2846_v32, %v707_v54  ;;  %v1520_v6 = vsub.s32 0, %v3050_v51  ;;  %v962_v21 = vor.u32 %v961_v39, %v960_v4  ;;  %v964_v26 = vshrl.u32 %v2363_v2, %v949_v25 }
 0x1a0   : > { %2246 = vcosq.f32 %v710_v5  ;;  %v3064_v48 = vand.u32 3, %v715_v17  ;;  %v982_v29 = vshll.u32 %v942_v28, 8  ;;  %v950_v11 = vshrl.u32 %v2358_v49, %v949_v25 }
 0x1a1   : > { %2248 = vsinq.f32 %v710_v5  ;;  %v2040_v45 = vmin.u32 %v1520_v6, %v3050_v51  ;;  %v965_v9 = vor.u32 %v964_v26, %v963_v47  ;;  %vm966_vm0 = vcmp.lt.s32.totalorder %v947_v1, 1 }
 0x1a2   : > { %v1769_v41 = vand.u32 2139095040, %v3044_v52  ;;  %vm968_vm1 = vcmp.lt.s32.totalorder %v947_v1, 3  ;;  %vm969_vm2 = vcmp.lt.s32.totalorder %v947_v1, 4  ;;  %v974_v35 = vsel %vm966_vm0, %v953_v3, %v956_v23 }
 0x1a3   : > { %v1522_v8 = vclz %v2040_v45  ;;  %v971_v20 = vsel %vm969_vm2, %v959_v43, 2102212464  ;;  %v975_v58 = vsel %vm969_vm2, %v962_v21, 920167782  ;;  %v978_v33 = vsel %vm966_vm0, %v956_v23, %v959_v43 }
 0x1a4   : > { %v979_v12 = vsel %vm969_vm2, %v965_v9, 1326507024  ;;  %vm967_vm3 = vcmp.lt.s32.totalorder %v947_v1, 2  ;;  %v976_v7 = vsel %vm968_vm1, %v959_v43, %v975_v58  ;;  %v970_v34 = vsel %vm966_vm0, %v950_v11, %v953_v3  ;;  %v365_v58 = vpop.f32.mrf.mxu0 }
 0x1a5   : > { %v2041_v14 = vadd.s32 4294967294, %v1522_v8  ;;  %v980_v37 = vsel %vm968_vm1, %v962_v21, %v979_v12  ;;  %v977_v0 = vsel %vm967_vm3, %v974_v35, %v976_v7  ;;  %v1770_v27 = vshrl.u32 %v1769_v41, 23 }
 0x1a6   : > { %v981_v61 = vsel %vm967_vm3, %v978_v33, %v980_v37  ;;  %v972_v46 = vsel %vm968_vm1, %v956_v23, %v971_v20  ;;  %v3077_v10 = vmul.u32.u64.low %v982_v29, %v977_v0  ;;  %v3078_v17 = vmul.u32.u64.high %v982_v29, %v977_v0, %v3077_v10 }
 0x1a7   : > { %vm2042_vm4 = vcmp.lt.s32.totalorder %v2041_v14, 0  ;;  %v3074_v24 = vmul.u32.u64.low %v982_v29, %v981_v61  ;;  %v3075_v25 = vmul.u32.u64.high %v982_v29, %v981_v61, %v3074_v24  ;;  %v2051_v28 = vadd.s32 4294967169, %v1770_v27 }
 0x1a8   : > { %v1525_v22 = vsel %vm2042_vm4, 0, %v2041_v14  ;;  %vm1456_vm5 = vcmp.lt.s32.totalorder %v2905_v13, 0  ;;  %v1510_v18 = vadd.s32 %v3006_v42, %v3012_v44  ;;  %vm714_vm6 = vweird.f32 %v2846_v32 }
 0x1a9   : > { %v1526_v31 = vsub.s32 32, %v1525_v22  ;;  %v1530_v56 = vsub.s32 4294967266, %v1525_v22  ;;  %vm717_vm7 = vcmp.lt.s32.totalorder %v3064_v48, 2  ;;  %v1540_v36 = vsub.s32 4, %v3037_v16 }
 0x1aa   : > { %v973_v63 = vsel %vm967_vm3, %v970_v34, %v972_v46  ;;  %v1776_v30 = vadd.s32 1, %v2051_v28  ;;  %v1527_v19 = vshll.u32 %v3050_v51, %v1525_v22  ;;  %vm991_vm8 = vc.u32 %v3075_v25, %v3077_v10 }
 0x1ab   : > { %v1528_v62 = vshrl.u32 %v1510_v18, %v1526_v31  ;;  %v1531_v50 = vadd.s32 127, %v1530_v56  ;;  %vm718_vm9 = vcmp.eq.s32.totalorder %v3064_v48, 0  ;;  %vm721_vm10 = vcmp.eq.s32.totalorder %v3064_v48, 2 }
 0x1ac   : > { %vm3095_vm12 = vcmp.le.f32.partialorder %v1454_v40, 0.7853982  ;;  %v992_v44 = vadd.s32 1, %v3078_v17  ;;  %vm1777_vm11 = vcmp.gt.s32.totalorder %v1776_v30, 0  ;;  %v989_v1 = vmul.u32 %v982_v29, %v973_v63 }
 0x1ad   : > { %v2247_v39 = vpop.eup %2246  ;;  %v1529_v51 = vor.u32 %v1528_v62, %v1527_v19  ;;  %v1532_v54 = vshll.u32 %v1531_v50, 23  ;;  %v1778_v3 = vsel %vm1777_vm11, %v1776_v30, 0  ;;  %v1766_v23 = vand.u32 2147483647, %v3044_v52 }
 0x1ae   : > { %v2249_v4 = vpop.eup %2248  ;;  %v722_v5 = vxor.u32 2147483648, %v2247_v39  ;;  %v993_v6 = vsel %vm991_vm8, %v992_v44, %v3078_v17  ;;  %v1780_v43 = vand.u32 31, %v1778_v3  ;;  %v1541_v47 = vsel %vm1456_vm5, %v1540_v36, %v3037_v16 }
 0x1af   : > { %v719_v21 = vxor.u32 2147483648, %v2249_v4  ;;  %v1533_v40 = vor.u32 4788187, %v1532_v54  ;;  %v994_v26 = vadd.s32 %v993_v6, %v989_v1  ;;  %v1536_v11 = vcvt.s32.f32 %v1529_v51 }
 0x1b0   : > { %v723_v45 = vsel %vm721_vm10, %v722_v5, %v2249_v4  ;;  %v1781_v29 = vsub.s32 32, %v1780_v43  ;;  %v1783_v9 = vshll.u32 %v2358_v49, %v1780_v43  ;;  %v1786_v20 = vshll.u32 %v2359_v53, %v1780_v43 }
 0x1b1   : > { %v720_v41 = vsel %vm718_vm9, %v2247_v39, %v719_v21  ;;  %v1534_v8 = vand.u32 2147483647, %v1533_v40  ;;  %v995_v35 = vadd.s32 536870912, %v994_v26  ;;  %v1789_v14 = vshll.u32 %v2360_v55, %v1780_v43 }
 0x1b2   : > { %v724_v16 = vsel %vm717_vm7, %v720_v41, %v723_v45  ;;  %v1784_v33 = vshrl.u32 %v2359_v53, %v1781_v29  ;;  %v1787_v12 = vshrl.u32 %v2360_v55, %v1781_v29  ;;  %v1790_v0 = vshrl.u32 %v2361_v57, %v1781_v29 }
 0x1b3   : > { %v725_v7 = vsel %vm714_vm6, nan, %v724_v16  ;;  %v1537_v37 = vmul.f32 %v1536_v11, %v1534_v8  ;;  %v996_v34 = vshrl.u32 %v995_v35, 30  ;;  %v1773_v61 = vand.u32 8388607, %v1766_v23 }
 0x1b4   : > { %1872 = vst [vmem:[%s2751_s11 + $0x10] sm:$0xff] %v725_v7  ;;  %v1792_v48 = vshll.u32 %v2361_v57, %v1780_v43  ;;  %v1793_v27 = vshrl.u32 %v2362_v59, %v1781_v29  ;;  %v3125_v46 = vadd.f32 %v2902_v15, %v365_v58  ;;  %v1543_v32 = vsel %vm3095_vm12, 0, %v1541_v47 }
 0x1b5   : > { %v1538_v24 = vxor.u32 2147483648, %v1537_v37  ;;  %v997_v22 = vshll.u32 %v996_v34, 30  ;;  %v1779_v17 = vshrl.u32 %v1778_v3, 5  ;;  %v1785_v28 = vor.u32 %v1784_v33, %v1783_v9 }
 0x1b6   : > { %v1791_v18 = vor.u32 %v1790_v0, %v1789_v14  ;;  %v1795_v31 = vshll.u32 %v2362_v59, %v1780_v43  ;;  %v1796_v56 = vshrl.u32 %v2363_v2, %v1781_v29  ;;  %v1788_v30 = vor.u32 %v1787_v12, %v1786_v20 }
 0x1b7   : > { %v1539_v36 = vsel %vm1456_vm5, %v1538_v24, %v1537_v37  ;;  %v3133_v63 = vsub.s32 %v994_v26, %v997_v22  ;;  %v1794_v19 = vor.u32 %v1793_v27, %v1792_v48  ;;  %v1547_v50 = vadd.s32 3, %v1543_v32 }
 0x1b8   : > { %v1542_v62 = vsel %vm3095_vm12, %v2905_v13, %v1539_v36  ;;  %v1774_v44 = vor.u32 8388608, %v1773_v61  ;;  %v1797_v39 = vor.u32 %v1796_v56, %v1795_v31  ;;  %v1782_v54 = vshrl.u32 %v2358_v49, %v1781_v29 }
 0x1b9   : > { %2250 = vcosq.f32 %v1542_v62  ;;  %v1000_v51 = vsub.s32 0, %v3133_v63  ;;  %vm1801_vm13 = vcmp.lt.s32.totalorder %v1779_v17, 4  ;;  %vm1798_vm14 = vcmp.lt.s32.totalorder %v1779_v17, 1 }
 0x1ba   : > { %2252 = vsinq.f32 %v1542_v62  ;;  %v1803_v1 = vsel %vm1801_vm13, %v1791_v18, 2102212464  ;;  %v833_v3 = vand.u32 2139095040, %v3125_v46  ;;  %vm1800_vm15 = vcmp.lt.s32.totalorder %v1779_v17, 3 }
 0x1bb   : > { %v2020_v4 = vmin.u32 %v1000_v51, %v3133_v63  ;;  %v1806_v5 = vsel %vm1798_vm14, %v1785_v28, %v1788_v30  ;;  %v1807_v42 = vsel %vm1801_vm13, %v1794_v19, 920167782  ;;  %v1020_v6 = vsub.s32 4, %v996_v34 }
 0x1bc   : > { %v1808_v43 = vsel %vm1800_vm15, %v1791_v18, %v1807_v42  ;;  %v1810_v21 = vsel %vm1798_vm14, %v1788_v30, %v1791_v18  ;;  %v1811_v40 = vsel %vm1801_vm13, %v1797_v39, 1326507024  ;;  %vm1799_vm0 = vcmp.lt.s32.totalorder %v1779_v17, 2 }
 0x1bd   : > { %v1002_v47 = vclz %v2020_v4  ;;  %v1802_v26 = vsel %vm1798_vm14, %v1782_v54, %v1785_v28  ;;  %v1804_v45 = vsel %vm1800_vm15, %v1788_v30, %v1803_v1  ;;  %v1809_v11 = vsel %vm1799_vm0, %v1806_v5, %v1808_v43 }
 0x1be   : > { %v1812_v29 = vsel %vm1800_vm15, %v1794_v19, %v1811_v40  ;;  %v1814_v9 = vshll.u32 %v1774_v44, 8  ;;  %v834_v41 = vshrl.u32 %v833_v3, 23  ;;  %vm936_vm1 = vcmp.lt.s32.totalorder %v2976_v38, 0  ;;  %v405_v40 = vpop.f32.mrf.mxu1 }
 0x1bf   : > { %v2021_v8 = vadd.s32 4294967294, %v1002_v47  ;;  %v1813_v35 = vsel %vm1799_vm0, %v1810_v21, %v1812_v29  ;;  %v1021_v12 = vsel %vm936_vm1, %v1020_v6, %v996_v34  ;;  %v1805_v14 = vsel %vm1799_vm0, %v1802_v26, %v1804_v45 }
 0x1c0   : > { %v3143_v20 = vmul.u32.u64.low %v1814_v9, %v1813_v35  ;;  %v3144_v58 = vmul.u32.u64.high %v1814_v9, %v1813_v35, %v3143_v20  ;;  %v3146_v16 = vmul.u32.u64.low %v1814_v9, %v1809_v11  ;;  %v3147_v33 = vmul.u32.u64.high %v1814_v9, %v1809_v11, %v3146_v16 }
 0x1c1   : > { %vm2022_vm2 = vcmp.lt.s32.totalorder %v2021_v8, 0  ;;  %v2015_v7 = vadd.s32 4294967169, %v834_v41  ;;  %v1548_v37 = vand.u32 3, %v1547_v50  ;;  %vm3154_vm3 = vcmp.le.f32.partialorder %v934_v60, 0.7853982 }
 0x1c2   : > { %v1005_v61 = vsel %vm2022_vm2, 0, %v2021_v8  ;;  %v830_v48 = vand.u32 2147483647, %v3125_v46  ;;  %v990_v27 = vadd.s32 %v3077_v10, %v3075_v25  ;;  %v1023_v34 = vsel %vm3154_vm3, 0, %v1021_v12 }
 0x1c3   : > { %v1006_v24 = vsub.s32 32, %v1005_v61  ;;  %v1010_v32 = vsub.s32 4294967266, %v1005_v61  ;;  %v840_v22 = vadd.s32 1, %v2015_v7  ;;  %v1821_v17 = vmul.u32 %v1814_v9, %v1805_v14 }
 0x1c4   : > { %vm1823_vm4 = vc.u32 %v3144_v58, %v3146_v16  ;;  %v1824_v60 = vadd.s32 1, %v3147_v33  ;;  %v1007_v28 = vshll.u32 %v3133_v63, %v1005_v61  ;;  %vm1553_vm6 = vcmp.eq.s32.totalorder %v1548_v37, 2 }
 0x1c5   : > { %v1008_v18 = vshrl.u32 %v990_v27, %v1006_v24  ;;  %v1011_v31 = vadd.s32 127, %v1010_v32  ;;  %vm841_vm5 = vcmp.gt.s32.totalorder %v840_v22, 0  ;;  %v1027_v39 = vadd.s32 3, %v1023_v34 }
 0x1c6   : > { %v2251_v56 = vpop.eup %2250  ;;  %v1825_v25 = vsel %vm1823_vm4, %v1824_v60, %v3147_v33  ;;  %v842_v10 = vsel %vm841_vm5, %v840_v22, 0  ;;  %v837_v51 = vand.u32 8388607, %v830_v48  ;;  %vm1550_vm7 = vcmp.eq.s32.totalorder %v1548_v37, 0 }
 0x1c7   : > { %v2253_v36 = vpop.eup %2252  ;;  %v1554_v30 = vxor.u32 2147483648, %v2251_v56  ;;  %v1009_v19 = vor.u32 %v1008_v18, %v1007_v28  ;;  %v1012_v62 = vshll.u32 %v1011_v31, 23  ;;  %v1826_v50 = vadd.s32 %v1825_v25, %v1821_v17 }
 0x1c8   : > { %v1551_v44 = vxor.u32 2147483648, %v2253_v36  ;;  %v844_v54 = vand.u32 31, %v842_v10  ;;  %vm1546_vm8 = vweird.f32 %v2905_v13  ;;  %vm1549_vm9 = vcmp.lt.s32.totalorder %v1548_v37, 2 }
 0x1c9   : > { %v1555_v63 = vsel %vm1553_vm6, %v1554_v30, %v2253_v36  ;;  %v1013_v1 = vor.u32 4788187, %v1012_v62  ;;  %v1827_v3 = vadd.s32 536870912, %v1826_v50  ;;  %v1016_v43 = vcvt.s32.f32 %v1009_v19 }
 0x1ca   : > { %v1552_v4 = vsel %vm1550_vm7, %v2251_v56, %v1551_v44  ;;  %v845_v5 = vsub.s32 32, %v844_v54  ;;  %v3173_v26 = vand.u32 3, %v1027_v39  ;;  %v838_v45 = vor.u32 8388608, %v837_v51 }
 0x1cb   : > { %v1556_v42 = vsel %vm1549_vm9, %v1552_v4, %v1555_v63  ;;  %v1014_v6 = vand.u32 2147483647, %v1013_v1  ;;  %v3171_v21 = vshrl.u32 %v1827_v3, 30  ;;  %v843_v41 = vshrl.u32 %v842_v10, 5 }
 0x1cc   : > { %v1557_v47 = vsel %vm1546_vm8, nan, %v1556_v42  ;;  %v848_v9 = vshrl.u32 %v2359_v53, %v845_v5  ;;  %v851_v13 = vshrl.u32 %v2360_v55, %v845_v5  ;;  %v854_v8 = vshrl.u32 %v2361_v57, %v845_v5 }
 0x1cd   : > { %1880 = vst [vmem:[%s2751_s11 + $0x50] sm:$0xff] %v1557_v47  ;;  %v1017_v11 = vmul.f32 %v1016_v43, %v1014_v6  ;;  %v1829_v29 = vshll.u32 %v3171_v21, 30  ;;  %v857_v35 = vshrl.u32 %v2362_v59, %v845_v5  ;;  %v3182_v20 = vadd.f32 %v2902_v15, %v405_v40 }
 0x1ce   : > { %v847_v14 = vshll.u32 %v2358_v49, %v844_v54  ;;  %v850_v7 = vshll.u32 %v2359_v53, %v844_v54  ;;  %v853_v37 = vshll.u32 %v2360_v55, %v844_v54  ;;  %v856_v61 = vshll.u32 %v2361_v57, %v844_v54 }
 0x1cf   : > { %v1018_v33 = vxor.u32 2147483648, %v1017_v11  ;;  %v3184_v12 = vsub.s32 %v1826_v50, %v1829_v29  ;;  %v859_v27 = vshll.u32 %v2362_v59, %v844_v54  ;;  %v860_v24 = vshrl.u32 %v2363_v2, %v845_v5 }
 0x1d0   : > { %v849_v22 = vor.u32 %v848_v9, %v847_v14  ;;  %v852_v34 = vor.u32 %v851_v13, %v850_v7  ;;  %v855_v60 = vor.u32 %v854_v8, %v853_v37  ;;  %v858_v28 = vor.u32 %v857_v35, %v856_v61 }
 0x1d1   : > { %v1019_v32 = vsel %vm936_vm1, %v1018_v33, %v1017_v11  ;;  %v1832_v15 = vsub.s32 0, %v3184_v12  ;;  %v861_v18 = vor.u32 %v860_v24, %v859_v27  ;;  %v878_v56 = vshll.u32 %v838_v45, 8 }
 0x1d2   : > { %v1022_v17 = vsel %vm3154_vm3, %v2976_v38, %v1019_v32  ;;  %v1665_v25 = vand.u32 2139095040, %v3182_v20  ;;  %v1852_v10 = vsub.s32 4, %v3171_v21  ;;  %v846_v36 = vshrl.u32 %v2358_v49, %v845_v5 }
 0x1d3   : > { %2254 = vcosq.f32 %v1022_v17  ;;  %v2052_v31 = vmin.u32 %v1832_v15, %v3184_v12  ;;  %vm862_vm10 = vcmp.lt.s32.totalorder %v843_v41, 1  ;;  %vm864_vm12 = vcmp.lt.s32.totalorder %v843_v41, 3 }
 0x1d4   : > { %2256 = vsinq.f32 %v1022_v17  ;;  %vm865_vm11 = vcmp.lt.s32.totalorder %v843_v41, 4  ;;  %v870_v0 = vsel %vm862_vm10, %v849_v22, %v852_v34  ;;  %v874_v50 = vsel %vm862_vm10, %v852_v34, %v855_v60 }
 0x1d5   : > { %v1834_v30 = vclz %v2052_v31  ;;  %v867_v19 = vsel %vm865_vm11, %v855_v60, 2102212464  ;;  %v871_v62 = vsel %vm865_vm11, %v858_v28, 920167782  ;;  %v875_v44 = vsel %vm865_vm11, %v861_v18, 1326507024 }
 0x1d6   : > { %vm863_vm13 = vcmp.lt.s32.totalorder %v843_v41, 2  ;;  %v872_v51 = vsel %vm864_vm12, %v855_v60, %v871_v62  ;;  %v876_v54 = vsel %vm864_vm12, %v858_v28, %v875_v44  ;;  %v866_v63 = vsel %vm862_vm10, %v846_v36, %v849_v22 }
 0x1d7   : > { %v2053_v39 = vadd.s32 4294967294, %v1834_v30  ;;  %v873_v1 = vsel %vm863_vm13, %v870_v0, %v872_v51  ;;  %v877_v3 = vsel %vm863_vm13, %v874_v50, %v876_v54  ;;  %v1666_v4 = vshrl.u32 %v1665_v25, 23  ;;  %v2091_v30 = vpop.f32.mrf.mxu0 }
 0x1d8   : > { %v868_v5 = vsel %vm864_vm12, %v852_v34, %v867_v19  ;;  %v3207_v42 = vmul.u32.u64.low %v878_v56, %v877_v3  ;;  %v3208_v6 = vmul.u32.u64.high %v878_v56, %v877_v3, %v3207_v42  ;;  %vm3216_vm15 = vcmp.le.f32.partialorder %v1766_v23, 0.7853982 }
 0x1d9   : > { %vm2054_vm14 = vcmp.lt.s32.totalorder %v2053_v39, 0  ;;  %v3210_v40 = vmul.u32.u64.low %v878_v56, %v873_v1  ;;  %v3211_v47 = vmul.u32.u64.high %v878_v56, %v873_v1, %v3210_v40  ;;  %v2047_v45 = vadd.s32 4294967169, %v1666_v4  ;;  %v3259_v4 = vld [vmem:[%s3502_s2] ss:$0 sm:$0xff] }
 0x1da   : > { %v1837_v43 = vsel %vm2054_vm14, 0, %v2053_v39  ;;  %v1822_v29 = vadd.s32 %v3146_v16, %v3144_v58  ;;  %vm1029_vm0 = vcmp.lt.s32.totalorder %v3173_v26, 2  ;;  %vm1768_vm1 = vcmp.lt.s32.totalorder %v3044_v52, 0 }
 0x1db   : > { %v1838_v9 = vsub.s32 32, %v1837_v43  ;;  %v1842_v13 = vsub.s32 4294967266, %v1837_v43  ;;  %v869_v8 = vsel %vm863_vm13, %v866_v63, %v868_v5  ;;  %v1672_v35 = vadd.s32 1, %v2047_v45 }
 0x1dc   : > { %vm1026_vm2 = vweird.f32 %v2976_v38  ;;  %v1839_v33 = vshll.u32 %v3184_v12, %v1837_v43  ;;  %vm887_vm3 = vc.u32 %v3208_v6, %v3210_v40  ;;  %vm1030_vm4 = vcmp.eq.s32.totalorder %v3173_v26, 0 }
 0x1dd   : > { %v1840_v23 = vshrl.u32 %v1822_v29, %v1838_v9  ;;  %v1843_v14 = vadd.s32 127, %v1842_v13  ;;  %v1853_v58 = vsel %vm1768_vm1, %v1852_v10, %v3171_v21  ;;  %v888_v16 = vadd.s32 1, %v3211_v47 }
 0x1de   : > { %vm1673_vm5 = vcmp.gt.s32.totalorder %v1672_v35, 0  ;;  %v885_v37 = vmul.u32 %v878_v56, %v869_v8  ;;  %vm1033_vm6 = vcmp.eq.s32.totalorder %v3173_v26, 2  ;;  %v1662_v24 = vand.u32 2147483647, %v3182_v20 }
 0x1df   : > { %v1841_v41 = vor.u32 %v1840_v23, %v1839_v33  ;;  %v1844_v7 = vshll.u32 %v1843_v14, 23  ;;  %v1674_v61 = vsel %vm1673_vm5, %v1672_v35, 0  ;;  %v889_v12 = vsel %vm887_vm3, %v888_v16, %v3211_v47 }
 0x1e0   : > { %v2255_v27 = vpop.eup %2254  ;;  %v1676_v32 = vand.u32 31, %v1674_v61  ;;  %v1855_v21 = vsel %vm3216_vm15, 0, %v1853_v58  ;;  %v890_v17 = vadd.s32 %v889_v12, %v885_v37  ;;  %v1669_v1 = vand.u32 8388607, %v1662_v24 }
 0x1e1   : > { %v2257_v15 = vpop.eup %2256  ;;  %v1034_v22 = vxor.u32 2147483648, %v2255_v27  ;;  %v1845_v34 = vor.u32 4788187, %v1844_v7  ;;  %v1848_v28 = vcvt.s32.f32 %v1841_v41  ;;  %v3262_v26 = vadd.f32 %v3259_v4, %v2091_v30 }
 0x1e2   : > { %v1031_v60 = vxor.u32 2147483648, %v2257_v15  ;;  %v1677_v18 = vsub.s32 32, %v1676_v32  ;;  %v1679_v31 = vshll.u32 %v2358_v49, %v1676_v32  ;;  %v891_v10 = vadd.s32 536870912, %v890_v17 }
 0x1e3   : > { %v1035_v56 = vsel %vm1033_vm6, %v1034_v22, %v2257_v15  ;;  %v1846_v25 = vand.u32 2147483647, %v1845_v34  ;;  %v1682_v36 = vshll.u32 %v2359_v53, %v1676_v32  ;;  %v1685_v50 = vshll.u32 %v2360_v55, %v1676_v32 }
 0x1e4   : > { %v1032_v0 = vsel %vm1030_vm4, %v2255_v27, %v1031_v60  ;;  %v1680_v19 = vshrl.u32 %v2359_v53, %v1677_v18  ;;  %v1683_v62 = vshrl.u32 %v2360_v55, %v1677_v18  ;;  %v3248_v51 = vshrl.u32 %v891_v10, 30 }
 0x1e5   : > { %v1036_v44 = vsel %vm1029_vm0, %v1032_v0, %v1035_v56  ;;  %v1849_v39 = vmul.f32 %v1848_v28, %v1846_v25  ;;  %v1686_v54 = vshrl.u32 %v2361_v57, %v1677_v18  ;;  %v1688_v3 = vshll.u32 %v2361_v57, %v1676_v32 }
 0x1e6   : > { %v1037_v63 = vsel %vm1026_vm2, nan, %v1036_v44  ;;  %v1859_v42 = vadd.s32 3, %v1855_v21  ;;  %v893_v43 = vshll.u32 %v3248_v51, 30  ;;  %v1675_v38 = vshrl.u32 %v1674_v61, 5 }
 0x1e7   : > { %1875 = vst [vmem:[%s2751_s11 + $0x28] sm:$0xff] %v1037_v63  ;;  %v1850_v5 = vxor.u32 2147483648, %v1849_v39  ;;  %v1681_v47 = vor.u32 %v1680_v19, %v1679_v31  ;;  %v1689_v45 = vshrl.u32 %v2362_v59, %v1677_v18  ;;  %v1691_v29 = vshll.u32 %v2362_v59, %v1676_v32 }
 0x1e8   : > { %v1692_v9 = vshrl.u32 %v2363_v2, %v1677_v18  ;;  %v3271_v8 = vsub.s32 %v890_v17, %v893_v43  ;;  %v1684_v35 = vor.u32 %v1683_v62, %v1682_v36  ;;  %v1687_v33 = vor.u32 %v1686_v54, %v1685_v50 }
 0x1e9   : > { %v1851_v13 = vsel %vm1768_vm1, %v1850_v5, %v1849_v39  ;;  %v1670_v14 = vor.u32 8388608, %v1669_v1  ;;  %v1690_v58 = vor.u32 %v1689_v45, %v1688_v3  ;;  %v1678_v7 = vshrl.u32 %v2358_v49, %v1677_v18 }
 0x1ea   : > { %v1854_v23 = vsel %vm3216_vm15, %v3044_v52, %v1851_v13  ;;  %v1693_v16 = vor.u32 %v1692_v9, %v1691_v29  ;;  %v896_v41 = vsub.s32 0, %v3271_v8  ;;  %v1145_v37 = vand.u32 2139095040, %v3262_v26 }
 0x1eb   : > { %2258 = vcosq.f32 %v1854_v23  ;;  %vm1694_vm7 = vcmp.lt.s32.totalorder %v1675_v38, 1  ;;  %vm1696_vm8 = vcmp.lt.s32.totalorder %v1675_v38, 3  ;;  %vm1697_vm9 = vcmp.lt.s32.totalorder %v1675_v38, 4 }
 0x1ec   : > { %2260 = vsinq.f32 %v1854_v23  ;;  %v2016_v61 = vmin.u32 %v896_v41, %v3271_v8  ;;  %v1699_v27 = vsel %vm1697_vm9, %v1687_v33, 2102212464  ;;  %v1702_v12 = vsel %vm1694_vm7, %v1681_v47, %v1684_v35 }
 0x1ed   : > { %v1703_v11 = vsel %vm1697_vm9, %v1690_v58, 920167782  ;;  %v1706_v15 = vsel %vm1694_vm7, %v1684_v35, %v1687_v33  ;;  %v1707_v22 = vsel %vm1697_vm9, %v1693_v16, 1326507024  ;;  %v1710_v34 = vshll.u32 %v1670_v14, 8 }
 0x1ee   : > { %v1704_v32 = vsel %vm1696_vm8, %v1687_v33, %v1703_v11  ;;  %v898_v21 = vclz %v2016_v61  ;;  %v916_v17 = vsub.s32 4, %v3248_v51  ;;  %vm1695_vm10 = vcmp.lt.s32.totalorder %v1675_v38, 2  ;;  %v375_v38 = vpop.f32.mrf.mxu0 }
 0x1ef   : > { %v1698_v60 = vsel %vm1694_vm7, %v1678_v7, %v1681_v47  ;;  %v1700_v28 = vsel %vm1696_vm8, %v1684_v35, %v1699_v27  ;;  %v1705_v18 = vsel %vm1695_vm10, %v1702_v12, %v1704_v32  ;;  %v1708_v31 = vsel %vm1696_vm8, %v1690_v58, %v1707_v22 }
 0x1f0   : > { %v1146_v56 = vshrl.u32 %v1145_v37, 23  ;;  %v2017_v25 = vadd.s32 4294967294, %v898_v21  ;;  %v1709_v10 = vsel %vm1695_vm10, %v1706_v15, %v1708_v31  ;;  %vm832_vm12 = vcmp.lt.s32.totalorder %v3125_v46, 0 }
 0x1f1   : > { %v3284_v36 = vmul.u32.u64.low %v1710_v34, %v1705_v18  ;;  %v3285_v30 = vmul.u32.u64.high %v1710_v34, %v1705_v18, %v3284_v36  ;;  %v3289_v0 = vmul.u32.u64.low %v1710_v34, %v1709_v10  ;;  %v3290_v19 = vmul.u32.u64.high %v1710_v34, %v1709_v10, %v3289_v0 }
 0x1f2   : > { %v2027_v62 = vadd.s32 4294967169, %v1146_v56  ;;  %v1860_v50 = vand.u32 3, %v1859_v42  ;;  %vm3294_vm11 = vcmp.le.f32.partialorder %v830_v48, 0.7853982  ;;  %vm2018_vm13 = vcmp.lt.s32.totalorder %v2017_v25, 0 }
 0x1f3   : > { %v1701_v39 = vsel %vm1695_vm10, %v1698_v60, %v1700_v28  ;;  %v886_v54 = vadd.s32 %v3210_v40, %v3208_v6  ;;  %v901_v63 = vsel %vm2018_vm13, 0, %v2017_v25  ;;  %v1142_v1 = vand.u32 2147483647, %v3262_v26 }
 0x1f4   : > { %v1152_v3 = vadd.s32 1, %v2027_v62  ;;  %vm1858_vm14 = vweird.f32 %v3044_v52  ;;  %v902_v5 = vsub.s32 32, %v901_v63  ;;  %v906_v43 = vsub.s32 4294967266, %v901_v63 }
 0x1f5   : > { %v917_v48 = vsel %vm832_vm12, %v916_v17, %v3248_v51  ;;  %v1720_v42 = vadd.s32 1, %v3285_v30  ;;  %v903_v47 = vshll.u32 %v3271_v8, %v901_v63  ;;  %v1717_v45 = vmul.u32 %v1710_v34, %v1701_v39 }
 0x1f6   : > { %vm1719_vm15 = vc.u32 %v3290_v19, %v3284_v36  ;;  %vm1153_vm0 = vcmp.gt.s32.totalorder %v1152_v3, 0  ;;  %v904_v6 = vshrl.u32 %v886_v54, %v902_v5  ;;  %v907_v40 = vadd.s32 127, %v906_v43 }
 0x1f7   : > { %v1721_v29 = vsel %vm1719_vm15, %v1720_v42, %v3285_v30  ;;  %v1154_v9 = vsel %vm1153_vm0, %v1152_v3, 0  ;;  %v1149_v51 = vand.u32 8388607, %v1142_v1  ;;  %v3313_v23 = vadd.f32 %v3259_v4, %v375_v38 }
 0x1f8   : > { %v2259_v13 = vpop.eup %2258  ;;  %v1722_v35 = vadd.s32 %v1721_v29, %v1717_v45  ;;  %v1156_v33 = vand.u32 31, %v1154_v9  ;;  %v905_v58 = vor.u32 %v904_v6, %v903_v47  ;;  %v908_v16 = vshll.u32 %v907_v40, 23 }
 0x1f9   : > { %v2261_v8 = vpop.eup %2260  ;;  %v1866_v14 = vxor.u32 2147483648, %v2259_v13  ;;  %v919_v41 = vsel %vm3294_vm11, 0, %v917_v48  ;;  %vm1865_vm1 = vcmp.eq.s32.totalorder %v1860_v50, 2  ;;  %vm1861_vm2 = vcmp.lt.s32.totalorder %v1860_v50, 2 }
 0x1fa   : > { %v1863_v7 = vxor.u32 2147483648, %v2261_v8  ;;  %v1723_v37 = vadd.s32 536870912, %v1722_v35  ;;  %v1157_v61 = vsub.s32 32, %v1156_v33  ;;  %vm1862_vm3 = vcmp.eq.s32.totalorder %v1860_v50, 0 }
 0x1fb   : > { %v1867_v27 = vsel %vm1865_vm1, %v1866_v14, %v2261_v8  ;;  %v909_v12 = vor.u32 4788187, %v908_v16  ;;  %v3317_v32 = vadd.s32 3, %v919_v41  ;;  %v1150_v15 = vor.u32 8388608, %v1149_v51 }
 0x1fc   : > { %v1864_v11 = vsel %vm1862_vm3, %v2259_v13, %v1863_v7  ;;  %v3319_v4 = vshrl.u32 %v1723_v37, 30  ;;  %v912_v21 = vcvt.s32.f32 %v905_v58  ;;  %v1160_v17 = vshrl.u32 %v2359_v53, %v1157_v61 }
 0x1fd   : > { %v1868_v22 = vsel %vm1861_vm2, %v1864_v11, %v1867_v27  ;;  %v910_v34 = vand.u32 2147483647, %v909_v12  ;;  %v1163_v18 = vshrl.u32 %v2360_v55, %v1157_v61  ;;  %v1041_v31 = vand.u32 2139095040, %v3313_v23 }
 0x1fe   : > { %v1869_v60 = vsel %vm1858_vm14, nan, %v1868_v22  ;;  %v1725_v28 = vshll.u32 %v3319_v4, 30  ;;  %v1155_v25 = vshrl.u32 %v1154_v9, 5  ;;  %v1159_v10 = vshll.u32 %v2358_v49, %v1156_v33 }
 0x1ff   : > { %1883 = vst [vmem:[%s2751_s11 + $0x68] sm:$0xff] %v1869_v60  ;;  %v913_v56 = vmul.f32 %v912_v21, %v910_v34  ;;  %v1166_v30 = vshrl.u32 %v2361_v57, %v1157_v61  ;;  %v1162_v62 = vshll.u32 %v2359_v53, %v1156_v33  ;;  %v1165_v52 = vshll.u32 %v2360_v55, %v1156_v33 }
 0x200   : > { %v3330_v0 = vsub.s32 %v1722_v35, %v1725_v28  ;;  %v1169_v50 = vshrl.u32 %v2362_v59, %v1157_v61  ;;  %v1161_v54 = vor.u32 %v1160_v17, %v1159_v10  ;;  %v1168_v63 = vshll.u32 %v2361_v57, %v1156_v33 }
 0x201   : > { %v914_v39 = vxor.u32 2147483648, %v913_v56  ;;  %v1172_v3 = vshrl.u32 %v2363_v2, %v1157_v61  ;;  %v1164_v43 = vor.u32 %v1163_v18, %v1162_v62  ;;  %v1167_v48 = vor.u32 %v1166_v30, %v1165_v52 }
 0x202   : > { %v1728_v5 = vsub.s32 0, %v3330_v0  ;;  %v1171_v42 = vshll.u32 %v2362_v59, %v1156_v33  ;;  %v1170_v47 = vor.u32 %v1169_v50, %v1168_v63  ;;  %v1190_v45 = vshll.u32 %v1150_v15, 8 }
 0x203   : > { %v915_v38 = vsel %vm832_vm12, %v914_v39, %v913_v56  ;;  %v1038_v6 = vand.u32 2147483647, %v3313_v23  ;;  %v1042_v13 = vshrl.u32 %v1041_v31, 23  ;;  %v1158_v35 = vshrl.u32 %v2358_v49, %v1157_v61 }
 0x204   : > { %v918_v40 = vsel %vm3294_vm11, %v3125_v46, %v915_v38  ;;  %v2048_v29 = vmin.u32 %v1728_v5, %v3330_v0  ;;  %v1173_v9 = vor.u32 %v1172_v3, %v1171_v42  ;;  %vm1174_vm4 = vcmp.lt.s32.totalorder %v1155_v25, 1 }
 0x205   : > { %2262 = vcosq.f32 %v918_v40  ;;  %vm1177_vm5 = vcmp.lt.s32.totalorder %v1155_v25, 4  ;;  %v1182_v8 = vsel %vm1174_vm4, %v1161_v54, %v1164_v43  ;;  %vm1175_vm6 = vcmp.lt.s32.totalorder %v1155_v25, 2 }
 0x206   : > { %2264 = vsinq.f32 %v918_v40  ;;  %v1730_v51 = vclz %v2048_v29  ;;  %v1179_v33 = vsel %vm1177_vm5, %v1167_v48, 2102212464  ;;  %vm1176_vm7 = vcmp.lt.s32.totalorder %v1155_v25, 3 }
 0x207   : > { %v1183_v14 = vsel %vm1177_vm5, %v1170_v47, 920167782  ;;  %v1186_v58 = vsel %vm1174_vm4, %v1164_v43, %v1167_v48  ;;  %v1178_v44 = vsel %vm1174_vm4, %v1158_v35, %v1161_v54  ;;  %v1187_v7 = vsel %vm1177_vm5, %v1173_v9, 1326507024 }
 0x208   : > { %v2049_v16 = vadd.s32 4294967294, %v1730_v51  ;;  %v1184_v41 = vsel %vm1176_vm7, %v1167_v48, %v1183_v14  ;;  %v1180_v37 = vsel %vm1176_vm7, %v1164_v43, %v1179_v33  ;;  %v1188_v12 = vsel %vm1176_vm7, %v1170_v47, %v1187_v7 }
 0x209   : > { %v1185_v27 = vsel %vm1175_vm6, %v1182_v8, %v1184_v41  ;;  %v2023_v11 = vadd.s32 4294967169, %v1042_v13  ;;  %v1189_v61 = vsel %vm1175_vm6, %v1186_v58, %v1188_v12  ;;  %v1718_v34 = vadd.s32 %v3284_v36, %v3290_v19 }
 0x20a   : > { %vm2050_vm8 = vcmp.lt.s32.totalorder %v2049_v16, 0  ;;  %v3349_v15 = vmul.u32.u64.low %v1190_v45, %v1185_v27  ;;  %v3350_v22 = vmul.u32.u64.high %v1190_v45, %v1185_v27, %v3349_v15  ;;  %v1181_v31 = vsel %vm1175_vm6, %v1178_v44, %v1180_v37 }
 0x20b   : > { %v1733_v21 = vsel %vm2050_vm8, 0, %v2049_v16  ;;  %v3355_v17 = vmul.u32.u64.low %v1190_v45, %v1189_v61  ;;  %v3356_v60 = vmul.u32.u64.high %v1190_v45, %v1189_v61, %v3355_v17  ;;  %v1048_v56 = vadd.s32 1, %v2023_v11 }
 0x20c   : > { %v1734_v28 = vsub.s32 32, %v1733_v21  ;;  %v1738_v18 = vsub.s32 4294967266, %v1733_v21  ;;  %v924_v10 = vand.u32 3, %v3317_v32  ;;  %v1735_v30 = vshll.u32 %v3330_v0, %v1733_v21 }
 0x20d   : > { %v1200_v50 = vadd.s32 1, %v3350_v22  ;;  %vm1049_vm9 = vcmp.gt.s32.totalorder %v1048_v56, 0  ;;  %v1748_v36 = vsub.s32 4, %v3319_v4  ;;  %v1197_v19 = vmul.u32 %v1190_v45, %v1181_v31 }
 0x20e   : > { %v1736_v62 = vshrl.u32 %v1718_v34, %v1734_v28  ;;  %v1739_v52 = vadd.s32 127, %v1738_v18  ;;  %vm1199_vm10 = vc.u32 %v3356_v60, %v3349_v15  ;;  %v1050_v39 = vsel %vm1049_vm9, %v1048_v56, 0 }
 0x20f   : > { %v1201_v63 = vsel %vm1199_vm10, %v1200_v50, %v3350_v22  ;;  %v1045_v32 = vand.u32 8388607, %v1038_v6  ;;  %vm922_vm12 = vweird.f32 %v3125_v46  ;;  %vm1664_vm11 = vcmp.lt.s32.totalorder %v3182_v20, 0 }
 0x210   : > { %v1737_v54 = vor.u32 %v1736_v62, %v1735_v30  ;;  %v1740_v25 = vshll.u32 %v1739_v52, 23  ;;  %v1202_v0 = vadd.s32 %v1201_v63, %v1197_v19  ;;  %v1052_v3 = vand.u32 31, %v1050_v39 }
 0x211   : > { %vm925_vm13 = vcmp.lt.s32.totalorder %v924_v10, 2  ;;  %vm926_vm14 = vcmp.eq.s32.totalorder %v924_v10, 0  ;;  %vm929_vm15 = vcmp.eq.s32.totalorder %v924_v10, 2  ;;  %vm3372_vm0 = vcmp.le.f32.partialorder %v1662_v24, 0.7853982 }
 0x212   : > { %v2263_v5 = vpop.eup %2262  ;;  %v1741_v48 = vor.u32 4788187, %v1740_v25  ;;  %v1749_v47 = vsel %vm1664_vm11, %v1748_v36, %v3319_v4  ;;  %v1203_v45 = vadd.s32 536870912, %v1202_v0  ;;  %v1053_v40 = vsub.s32 32, %v1052_v3 }
 0x213   : > { %v2265_v42 = vpop.eup %2264  ;;  %v930_v38 = vxor.u32 2147483648, %v2263_v5  ;;  %v1744_v13 = vcvt.s32.f32 %v1737_v54  ;;  %v1046_v35 = vor.u32 8388608, %v1045_v32  ;;  %v1055_v24 = vshll.u32 %v2358_v49, %v1052_v3 }
 0x214   : > { %v927_v29 = vxor.u32 2147483648, %v2265_v42  ;;  %v1742_v9 = vand.u32 2147483647, %v1741_v48  ;;  %v3379_v33 = vshrl.u32 %v1203_v45, 30  ;;  %v1056_v8 = vshrl.u32 %v2359_v53, %v1053_v40 }
 0x215   : > { %v931_v51 = vsel %vm929_vm15, %v930_v38, %v2265_v42  ;;  %v1059_v16 = vshrl.u32 %v2360_v55, %v1053_v40  ;;  %v1062_v4 = vshrl.u32 %v2361_v57, %v1053_v40  ;;  %v1051_v7 = vshrl.u32 %v1050_v39, 5 }
 0x216   : > { %v928_v14 = vsel %vm926_vm14, %v2263_v5, %v927_v29  ;;  %v1745_v58 = vmul.f32 %v1744_v13, %v1742_v9  ;;  %v1205_v41 = vshll.u32 %v3379_v33, 30  ;;  %v1058_v37 = vshll.u32 %v2359_v53, %v1052_v3 }
 0x217   : > { %v932_v44 = vsel %vm925_vm13, %v928_v14, %v931_v51  ;;  %v1057_v11 = vor.u32 %v1056_v8, %v1055_v24  ;;  %v1061_v61 = vshll.u32 %v2360_v55, %v1052_v3  ;;  %v1064_v21 = vshll.u32 %v2361_v57, %v1052_v3 }
 0x218   : > { %v933_v27 = vsel %vm922_vm12, nan, %v932_v44  ;;  %v1746_v12 = vxor.u32 2147483648, %v1745_v58  ;;  %v1206_v22 = vsub.s32 %v1202_v0, %v1205_v41  ;;  %v1060_v34 = vor.u32 %v1059_v16, %v1058_v37 }
 0x219   : > { %1874 = vst [vmem:[%s2751_s11 + $0x20] sm:$0xff] %v933_v27  ;;  %v1065_v17 = vshrl.u32 %v2362_v59, %v1053_v40  ;;  %v1063_v18 = vor.u32 %v1062_v4, %v1061_v61  ;;  %v1067_v53 = vshll.u32 %v2362_v59, %v1052_v3  ;;  %v1068_v46 = vshrl.u32 %v2363_v2, %v1053_v40 }
 0x21a   : > { %v1747_v28 = vsel %vm1664_vm11, %v1746_v12, %v1745_v58  ;;  %v1208_v55 = vsub.s32 0, %v1206_v22  ;;  %v1751_v10 = vsel %vm3372_vm0, 0, %v1749_v47  ;;  %v1086_v30 = vshll.u32 %v1046_v35, 8 }
 0x21b   : > { %v1750_v31 = vsel %vm3372_vm0, %v3182_v20, %v1747_v28  ;;  %v1066_v56 = vor.u32 %v1065_v17, %v1064_v21  ;;  %v1069_v57 = vor.u32 %v1068_v46, %v1067_v53  ;;  %vm1070_vm1 = vcmp.lt.s32.totalorder %v1051_v7, 1 }
 0x21c   : > { %2266 = vcosq.f32 %v1750_v31  ;;  %v2028_v62 = vmin.u32 %v1208_v55, %v1206_v22  ;;  %vm1073_vm2 = vcmp.lt.s32.totalorder %v1051_v7, 4  ;;  %v1054_v59 = vshrl.u32 %v2358_v49, %v1053_v40 }
 0x21d   : > { %2268 = vsinq.f32 %v1750_v31  ;;  %v1075_v52 = vsel %vm1073_vm2, %v1063_v18, 2102212464  ;;  %v1078_v2 = vsel %vm1070_vm1, %v1057_v11, %v1060_v34  ;;  %v1079_v50 = vsel %vm1073_vm2, %v1066_v56, 920167782 }
 0x21e   : > { %v1210_v36 = vclz %v2028_v62  ;;  %vm1071_vm3 = vcmp.lt.s32.totalorder %v1051_v7, 2  ;;  %vm1072_vm4 = vcmp.lt.s32.totalorder %v1051_v7, 3  ;;  %v1082_v19 = vsel %vm1070_vm1, %v1060_v34, %v1063_v18 }
 0x21f   : > { %v1074_v39 = vsel %vm1070_vm1, %v1054_v59, %v1057_v11  ;;  %v1076_v54 = vsel %vm1072_vm4, %v1060_v34, %v1075_v52  ;;  %v1080_v25 = vsel %vm1072_vm4, %v1063_v18, %v1079_v50  ;;  %v1083_v63 = vsel %vm1073_vm2, %v1069_v57, 1326507024 }
 0x220   : > { %v2029_v32 = vadd.s32 4294967294, %v1210_v36  ;;  %v1081_v0 = vsel %vm1071_vm3, %v1078_v2, %v1080_v25  ;;  %v1084_v3 = vsel %vm1072_vm4, %v1066_v56, %v1083_v63  ;;  %v1755_v5 = vadd.s32 3, %v1751_v10 }
 0x221   : > { %v1085_v43 = vsel %vm1071_vm3, %v1082_v19, %v1084_v3  ;;  %v3405_v48 = vmul.u32.u64.low %v1086_v30, %v1081_v0  ;;  %v3406_v42 = vmul.u32.u64.high %v1086_v30, %v1081_v0, %v3405_v48  ;;  %v1077_v49 = vsel %vm1071_vm3, %v1074_v39, %v1076_v54 }
 0x222   : > { %vm2030_vm5 = vcmp.lt.s32.totalorder %v2029_v32, 0  ;;  %v3408_v38 = vmul.u32.u64.low %v1086_v30, %v1085_v43  ;;  %v3409_v47 = vmul.u32.u64.high %v1086_v30, %v1085_v43, %v3408_v38  ;;  %v1198_v40 = vadd.s32 %v3349_v15, %v3356_v60 }
 0x223   : > { %v1213_v45 = vsel %vm2030_vm5, 0, %v2029_v32  ;;  %v1756_v13 = vand.u32 3, %v1755_v5  ;;  %v1093_v35 = vmul.u32 %v1086_v30, %v1077_v49  ;;  %v1096_v51 = vadd.s32 1, %v3406_v42 }
 0x224   : > { %v1214_v29 = vsub.s32 32, %v1213_v45  ;;  %v1218_v9 = vsub.s32 4294967266, %v1213_v45  ;;  %v1215_v24 = vshll.u32 %v1206_v22, %v1213_v45  ;;  %vm1095_vm6 = vc.u32 %v3409_v47, %v3405_v48 }
 0x225   : > { %v1097_v58 = vsel %vm1095_vm6, %v1096_v51, %v3406_v42  ;;  %vm1761_vm7 = vcmp.eq.s32.totalorder %v1756_v13, 2  ;;  %vm1757_vm8 = vcmp.lt.s32.totalorder %v1756_v13, 2  ;;  %vm1758_vm9 = vcmp.eq.s32.totalorder %v1756_v13, 0 }
 0x226   : > { %v1216_v8 = vshrl.u32 %v1198_v40, %v1214_v29  ;;  %v1219_v14 = vadd.s32 127, %v1218_v9  ;;  %v1098_v41 = vadd.s32 %v1097_v58, %v1093_v35  ;;  %vm1754_vm10 = vweird.f32 %v3182_v20 }
 0x227   : > { %vm1144_vm12 = vcmp.lt.s32.totalorder %v3262_v26, 0  ;;  %v1228_v31 = vsub.s32 4, %v3379_v33  ;;  %vm1143_vm11 = vcmp.le.f32.partialorder %v1142_v1, 0.7853982  ;;  %v1094_v50 = vadd.s32 %v3405_v48, %v3409_v47 }
 0x228   : > { %v1217_v4 = vor.u32 %v1216_v8, %v1215_v24  ;;  %v1220_v44 = vshll.u32 %v1219_v14, 23  ;;  %v1099_v27 = vadd.s32 536870912, %v1098_v41  ;;  %vm1234_vm1 = vweird.f32 %v3262_v26 }
 0x229   : > { %v2267_v16 = vpop.eup %2266  ;;  %v1229_v57 = vsel %vm1144_vm12, %v1228_v31, %v3379_v33  ;;  %vm1040_vm2 = vcmp.lt.s32.totalorder %v3313_v23, 0  ;;  %vm1039_vm3 = vcmp.le.f32.partialorder %v1038_v6, 0.7853982 }
 0x22a   : > { %v2269_v7 = vpop.eup %2268  ;;  %v1762_v37 = vxor.u32 2147483648, %v2267_v16  ;;  %v1221_v60 = vor.u32 4788187, %v1220_v44  ;;  %v1224_v22 = vcvt.s32.f32 %v1217_v4  ;;  %v1100_v34 = vshrl.u32 %v1099_v27, 30 }
 0x22b   : > { %v1759_v15 = vxor.u32 2147483648, %v2269_v7  ;;  %v1231_v62 = vsel %vm1143_vm11, 0, %v1229_v57 }
 0x22c   : > { %v1763_v12 = vsel %vm1761_vm7, %v1762_v37, %v2269_v7  ;;  %v1222_v61 = vand.u32 2147483647, %v1221_v60  ;;  %v1101_v18 = vshll.u32 %v1100_v34, 30  ;;  %v1235_v52 = vadd.s32 3, %v1231_v62 }
 0x22d   : > { %v1760_v11 = vsel %vm1758_vm9, %v2267_v16, %v1759_v15  ;;  %v1124_v9 = vsub.s32 4, %v1100_v34  ;;  %vm1130_vm7 = vweird.f32 %v3313_v23 }
 0x22e   : > { %v1764_v21 = vsel %vm1757_vm8, %v1760_v11, %v1763_v12  ;;  %v1225_v28 = vmul.f32 %v1224_v22, %v1222_v61  ;;  %v1102_v46 = vsub.s32 %v1098_v41, %v1101_v18  ;;  %v1236_v25 = vand.u32 3, %v1235_v52 }
 0x22f   : > { %v1765_v17 = vsel %vm1754_vm10, nan, %v1764_v21  ;;  %v1125_v51 = vsel %vm1040_vm2, %v1124_v9, %v1100_v34 }
 0x230   : > { %1882 = vst [vmem:[%s2751_s11 + $0x60] sm:$0xff] %v1765_v17  ;;  %v1226_v53 = vxor.u32 2147483648, %v1225_v28  ;;  %v1104_v56 = vsub.s32 0, %v1102_v46  ;;  %vm1241_vm14 = vcmp.eq.s32.totalorder %v1236_v25, 2  ;;  %vm1238_vm15 = vcmp.eq.s32.totalorder %v1236_v25, 0 }
 0x231   : > { %vm1237_vm0 = vcmp.lt.s32.totalorder %v1236_v25, 2  ;;  %v1127_v24 = vsel %vm1039_vm3, 0, %v1125_v51 }
 0x232   : > { %v1227_v55 = vsel %vm1144_vm12, %v1226_v53, %v1225_v28  ;;  %v2024_v20 = vmin.u32 %v1104_v56, %v1102_v46 }
 0x233   : > { %v1230_v10 = vsel %vm1143_vm11, %v3262_v26, %v1227_v55  ;;  %v1131_v26 = vadd.s32 3, %v1127_v24 }
 0x234   : > { %2270 = vcosq.f32 %v1230_v10  ;;  %v1106_v30 = vclz %v2024_v20 }
 0x235   : > { %2272 = vsinq.f32 %v1230_v10  ;;  %v1132_v8 = vand.u32 3, %v1131_v26 }
 0x236   : > { %v2025_v59 = vadd.s32 4294967294, %v1106_v30 }
 0x237   : > { %vm1137_vm4 = vcmp.eq.s32.totalorder %v1132_v8, 2  ;;  %vm1134_vm5 = vcmp.eq.s32.totalorder %v1132_v8, 0  ;;  %vm1133_vm6 = vcmp.lt.s32.totalorder %v1132_v8, 2 }
 0x238   : > { %vm2026_vm13 = vcmp.lt.s32.totalorder %v2025_v59, 0 }
 0x239   : > { %v1109_v2 = vsel %vm2026_vm13, 0, %v2025_v59 }
 0x23a   : > { %v1110_v36 = vsub.s32 32, %v1109_v2  ;;  %v1114_v19 = vsub.s32 4294967266, %v1109_v2  ;;  %v1111_v1 = vshll.u32 %v1102_v46, %v1109_v2 }
 0x23c   : > { %v1112_v39 = vshrl.u32 %v1094_v50, %v1110_v36  ;;  %v1115_v54 = vadd.s32 127, %v1114_v19 }
 0x23e   : > { %v1113_v63 = vor.u32 %v1112_v39, %v1111_v1  ;;  %v1116_v32 = vshll.u32 %v1115_v54, 23 }
 0x240   : > { %v1117_v5 = vor.u32 4788187, %v1116_v32  ;;  %v1120_v38 = vcvt.s32.f32 %v1113_v63 }
 0x241   : > { %v2271_v0 = vpop.eup %2270 }
 0x242   : > { %v2273_v33 = vpop.eup %2272  ;;  %v1242_v3 = vxor.u32 2147483648, %v2271_v0  ;;  %v1118_v49 = vand.u32 2147483647, %v1117_v5 }
 0x243   : > { %v1239_v43 = vxor.u32 2147483648, %v2273_v33 }
 0x244   : > { %v1243_v42 = vsel %vm1241_vm14, %v1242_v3, %v2273_v33  ;;  %v1121_v45 = vmul.f32 %v1120_v38, %v1118_v49 }
 0x245   : > { %v1240_v48 = vsel %vm1238_vm15, %v2271_v0, %v1239_v43 }
 0x246   : > { %v1244_v47 = vsel %vm1237_vm0, %v1240_v48, %v1243_v42  ;;  %v1122_v29 = vxor.u32 2147483648, %v1121_v45 }
 0x247   : > { %v1245_v40 = vsel %vm1234_vm1, nan, %v1244_v47 }
 0x248   : > { %1877 = vst [vmem:[%s2751_s11 + $0x38] sm:$0xff] %v1245_v40  ;;  %v1123_v13 = vsel %vm1040_vm2, %v1122_v29, %v1121_v45 }
 0x249   : > { %v1126_v35 = vsel %vm1039_vm3, %v3313_v23, %v1123_v13 }
 0x24a   : > { %2274 = vcosq.f32 %v1126_v35 }
 0x24b   : > { %2276 = vsinq.f32 %v1126_v35 }
 0x257   : > { %v2275_v14 = vpop.eup %2274 }
 0x258   : > { %v2277_v58 = vpop.eup %2276  ;;  %v1138_v16 = vxor.u32 2147483648, %v2275_v14 }
 0x259   : > { %v1135_v4 = vxor.u32 2147483648, %v2277_v58 }
 0x25a   : > { %v1139_v44 = vsel %vm1137_vm4, %v1138_v16, %v2277_v58  ;;  %1891 = sbr.rel (!%p2427_p4) target bundleno = 634 (0x27a), region = 36 }
 0x25b   : > { %v1136_v6 = vsel %vm1134_vm5, %v2275_v14, %v1135_v4 }
 0x25c   : > { %v1140_v41 = vsel %vm1133_vm6, %v1136_v6, %v1139_v44 }
 0x25d   : > { %v1141_v7 = vsel %vm1130_vm7, nan, %v1140_v41 }
 0x25e   : > { %1876 = vst [vmem:[%s2751_s11 + $0x30] sm:$0xff] %v1141_v7 }
 0x25f   : > { %s3538_s27 = smov (!%p1894_p12, %s1893_s27), 14 }
 0x260   : > { %s3440_s29 = sshll.u32 %s3538_s27, 7 }
 0x261   : > { %s1898_s30 = ssub.s32 1792, %s3440_s29 }
 0x262   : > { %1899 = vsyncadd %s3435_s26, %s1898_s30  ;;  %p2056_p13 = scmp.ne.s32.totalorder %s3440_s29, 0  ;;  %s2062_s4 = smul.u32 1792, %s2348_s15 }
 0x263   : > { %s1905_s5 = sshll.u32 %s2751_s11, 4  ;;  %s2364_s8 = smov [#allocation2]   ;;  %s3452_s5 = int_to_ptr.vmem [resolvable:$true] %s1905_s5 }
 0x264   : > { %s3450_s7 = scalar_lea.hbm %s3503_s3, %s2062_s4  ;;  %s2280_s28 = scalar_lea.vmem %s3452_s5, %s3440_s29 }
 0x265   : > { %p2281_p0 = scmp.ne.s32.totalorder %s3452_s5, %s2280_s28  ;;  %s2284_s9 = sshll.u32 %s2364_s8, 4  ;;  %s2285_s9 = int_to_ptr.vmem [resolvable:$false] %s2284_s9 }
 0x266   : > { %s2286_s15 = scalar_lea.vmem %s2285_s9, 3584  ;;  %p2287_p3 = scmp.lt.s32.totalorder %s3452_s5, %s2285_s9 }
 0x267   : > { %p2282_p1 = pnand %p2281_p0, %p2056_p13  ;;  %p2288_p4 = scmp.lt.s32.totalorder %s2286_s15, %s2280_s28 }
 0x269   : > { %p2283_p2 = pneg %p2282_p1  ;;  %p2289_p5 = por %p2288_p4, %p2287_p3 }
 0x26b   : > { %p2290_p6 = pnand %p2289_p5, %p2283_p2 }
 0x26d   : > { %2293 = shalt.err (!%p2290_p6)
}
 0x26e   : > { %s2294_s10 = scalar_lea.hbm %s3450_s7, %s3440_s29  ;;  %s2298_s19 = scalar_lea.hbm %s3503_s3, 3200 }
 0x26f   : > { %p2295_p7 = scmp.ne.s32.totalorder %s3450_s7, %s2294_s10  ;;  %p2299_p11 = scmp.lt.s32.totalorder %s3450_s7, %s3503_s3 }
 0x270   : > { %p2300_p12 = scmp.lt.s32.totalorder %s2298_s19, %s2294_s10 }
 0x271   : > { %p2296_p9 = pnand %p2295_p7, %p2056_p13 }
 0x272   : > { %p2301_p0 = por %p2300_p12, %p2299_p11 }
 0x273   : > { %p2297_p10 = pneg %p2296_p9 }
 0x275   : > { %p2302_p1 = pnand %p2301_p0, %p2297_p10 }
 0x277   : > { %2305 = shalt.err (!%p2302_p1)
}
 0x278   : > { %s2365_s27 = smov 128   ;;  %s2366_s30 = smov 8  }
 0x279   : > { %1911 = dma.vmem_to_hbm [thread:$0]  (%p2056_p13), %s3452_s5, %s3440_s29, %s3450_s7, %s3435_s26, %s2365_s27, %s2365_s27, %s2366_s30  }
 0x27a PF: > { %p2165_p2 = scmp.ge.s32.totalorder %s2356_s17, 2  ;;  %s1920_s4 = sand.u32 1, %s2336_s12  }
 0x27b   : > { %s1921_s22 = scalar_lea.sflag [#allocation3], %s1920_s4 }
 0x27c   : > { %p2162_p3 = pnand %p2165_p2, %p2434_p8 }
 0x27e   : > { %p2163_p4 = pneg %p2162_p3 }
 0x280   : > { %2331 = dma.done.wait (%p2163_p4), %s1921_s22, 1792  }
 0x281   : > { %2333 = vsyncadd (%p2163_p4), %s1921_s22, 4294965504  ;;  %s16_s17 = sadd.s32 1, %s2356_s17   ;;  %s3530_s12 = smov %s2340_s13 }
 0x282   : > { %p13_p5 = scmp.ge.s32.totalorder %s16_s17, 4   ;;  %s3531_s13 = smov %s2344_s14 }
 0x283   : > { %s3532_s14 = smov %s2440_s25  ;;  %s3533_s15 = smov %s2352_s16 }
 0x284   : > { %s3534_s16 = smov %s3536_s20  ;;  %15 = sbr.rel (!%p13_p5) target bundleno = 4 (0x4), region = 67 }
 0x289   :  { %1926 = vsyncpa [#allocation3], 1 }
 0x28a   :  { %1928 = vsyncpa [#allocation3 + $0x1], 1 }

</bundles_post_ra>
